<compile_context>
chip_gen: v7x
topology: tpu7x:2x2x1
jax: 0.10.0
libtpu: 0.0.40
codegen_flags: <defaults>
</compile_context>

<pallas_src>
import functools

import jax
import jax.numpy as jnp
from jax.experimental import pallas as pl
from jax.experimental.pallas import tpu as pltpu


# ----------------------------- Pallas kernels -----------------------------

# Conv2d(k=4, s=2, p=1): input row hit by tap ky at output row y is
#   2*y + ky - 1 = 2*(y + dy) + t   with (dy, t) given by this table:
_TAP = ((-1, 1), (0, 0), (0, 1), (1, 0))


def _conv_kernel(x_ref, w_ref, b_ref, o_ref, sp_ref, *, apply_relu):
    # x_ref : (1, Ho, Wo, 4*Cin)   space-to-depth input for one image (f32)
    #                              last-dim order = (t, u, cin)
    # w_ref : (16*Cin, Cout)       im2col weights, row = (ky*4 + kx)*Cin + ci (bf16)
    # b_ref : (1, Cout)            bias (f32)
    # o_ref : (1, Ho, Wo, Cout)    conv(+ReLU) output (f32)
    # sp_ref: (Ho+2, Wo+2, 4*Cin)  VMEM scratch: zero-padded space-to-depth input
    _, Ho, Wo, C4 = x_ref.shape
    Cin = C4 // 4
    Cout = o_ref.shape[-1]

    # Zero-pad into VMEM scratch (implements padding=1 without an HBM round trip).
    sp_ref[...] = jnp.zeros_like(sp_ref)
    sp_ref[1:Ho + 1, 1:Wo + 1, :] = x_ref[0]

    # im2col: 16 cheap shifted ref views -> one (Ho*Wo, 16*Cin) patch matrix.
    # Column order = (ky, kx, cin), matching the pre-arranged weight matrix.
    taps = []
    for ky in range(4):
        dy, t = _TAP[ky]
        for kx in range(4):
            dx, u = _TAP[kx]
            c0 = (2 * t + u) * Cin
            taps.append(sp_ref[1 + dy:1 + dy + Ho,
                               1 + dx:1 + dx + Wo,
                               c0:c0 + Cin])
    patches = jnp.concatenate(taps, axis=-1).reshape(Ho * Wo, 16 * Cin)

    # Single fused MXU matmul: bf16 operands, f32 accumulation.
    acc = jnp.dot(patches.astype(jnp.bfloat16), w_ref[...],
                  preferred_element_type=jnp.float32)
    acc = acc + b_ref[...]
    if apply_relu:
        acc = jnp.maximum(acc, 0.0)
    o_ref[0] = acc.reshape(Ho, Wo, Cout).astype(o_ref.dtype)


def _dense_kernel(x_ref, w_ref, b_ref, o_ref):
    # x: (B, F) f32, w: (F, L) bf16, b: (1, L) f32 -> o: (B, L) f32 (no activation)
    o_ref[...] = (jnp.dot(x_ref[...].astype(jnp.bfloat16), w_ref[...],
                          preferred_element_type=jnp.float32)
                  + b_ref[...])


# ----------------------------- kernel wrappers -----------------------------

_VMEM = pl.BlockSpec(memory_space=pltpu.MemorySpace.VMEM)


def conv_s2d_layer(s, w2, bias, *, apply_relu=True):
    # s : (N, Ho, Wo, 4*Cin) space-to-depth input; w2: (16*Cin, Cout) bf16.
    N, Ho, Wo, C4 = s.shape
    K, Cout = w2.shape
    assert K == 4 * C4
    return pl.pallas_call(
        functools.partial(_conv_kernel, apply_relu=apply_relu),
        out_shape=jax.ShapeDtypeStruct((N, Ho, Wo, Cout), jnp.float32),
        grid=(N,),
        in_specs=[
            pl.BlockSpec((1, Ho, Wo, C4), lambda n: (n, 0, 0, 0)),
            pl.BlockSpec((K, Cout), lambda n: (0, 0)),
            pl.BlockSpec((1, Cout), lambda n: (0, 0)),
        ],
        out_specs=pl.BlockSpec((1, Ho, Wo, Cout), lambda n: (n, 0, 0, 0)),
        scratch_shapes=[pltpu.VMEM((Ho + 2, Wo + 2, C4), jnp.float32)],
        compiler_params=pltpu.CompilerParams(
            dimension_semantics=("parallel",),   # batch axis -> both TCs on v7x
            vmem_limit_bytes=32 * 1024 * 1024,
        ),
    )(s, w2, bias.reshape(1, Cout))


def dense(x, w_bf16, b):
    B, _ = x.shape
    L = w_bf16.shape[1]
    return pl.pallas_call(
        _dense_kernel,
        out_shape=jax.ShapeDtypeStruct((B, L), jnp.float32),
        in_specs=[_VMEM, _VMEM, _VMEM],
        out_specs=_VMEM,
    )(x, w_bf16, b.reshape(1, L))


# ------------------------------ layout glue --------------------------------

def _space_to_depth_nhwc(x):
    # (N, H, W, C) -> (N, H/2, W/2, 4*C), last-dim order (t, u, c)
    N, H, W, C = x.shape
    return (x.reshape(N, H // 2, 2, W // 2, 2, C)
             .transpose(0, 1, 3, 2, 4, 5)
             .reshape(N, H // 2, W // 2, 4 * C))


def _space_to_depth_nchw(x):
    # (N, C, H, W) -> (N, H/2, W/2, 4*C)  (fuses the NCHW->NHWC relayout)
    N, C, H, W = x.shape
    return (x.reshape(N, C, H // 2, 2, W // 2, 2)
             .transpose(0, 2, 4, 3, 5, 1)
             .reshape(N, H // 2, W // 2, 4 * C))


# ----------------------- parameters (PyTorch layout) ------------------------

def init_params(key, channels, input_shape, latent_dim):
    C0, H0, W0 = input_shape
    n = len(channels)
    keys = jax.random.split(key, 2 * n + 2)
    convs = []
    cin = C0
    for i, ch in enumerate(channels):
        fan_in = cin * 16
        w = jax.random.normal(keys[2 * i], (ch, cin, 4, 4), jnp.float32) / jnp.sqrt(fan_in)
        b = jax.random.normal(keys[2 * i + 1], (ch,), jnp.float32) * 0.1
        convs.append((w, b))
        cin = ch
    Hf, Wf = H0 // (2 ** n), W0 // (2 ** n)
    F = cin * Hf * Wf
    wd = jax.random.normal(keys[-2], (latent_dim, F), jnp.float32) / jnp.sqrt(F)
    bd = jax.random.normal(keys[-1], (latent_dim,), jnp.float32) * 0.1
    return {"convs_pt": convs, "dense_w_pt": wd, "dense_b": bd,
            "final_chw": (cin, Hf, Wf)}


def prepare_kernel_params(params):
    """Convert PyTorch-layout params to the kernel layouts (done once)."""
    convs_k = []
    for (w, b) in params["convs_pt"]:
        cout, cin = w.shape[0], w.shape[1]
        # (Cout, Cin, 4, 4) -> (16*Cin, Cout), row = (ky*4 + kx)*Cin + ci
        w2 = (jnp.transpose(w, (2, 3, 1, 0))
                 .reshape(16 * cin, cout)
                 .astype(jnp.bfloat16))
        convs_k.append((w2, b.astype(jnp.float32)))
    C, Hf, Wf = params["final_chw"]
    L = params["dense_w_pt"].shape[0]
    # Permute Linear weight columns from CHW-flatten to HWC-flatten order, so
    # the NHWC conv output can be flattened directly (no activation transpose).
    wd = (params["dense_w_pt"].reshape(L, C, Hf, Wf)
          .transpose(2, 3, 1, 0)
          .reshape(Hf * Wf * C, L)
          .astype(jnp.bfloat16))
    return {"convs": convs_k, "dense_w": wd, "dense_b": params["dense_b"]}


# ------------------------------- forward -----------------------------------

@jax.jit
def conv_encoder_forward(x_nchw, kparams):
    n_layers = len(kparams["convs"])
    s = _space_to_depth_nchw(x_nchw)
    h = None
    for i, (w2, b) in enumerate(kparams["convs"]):
        h = conv_s2d_layer(s, w2, b, apply_relu=True)
        if i + 1 < n_layers:
            s = _space_to_depth_nhwc(h)
    h = h.reshape(h.shape[0], -1)          # HWC flatten (weights pre-permuted)
    return dense(h, kparams["dense_w"], kparams["dense_b"])


# ---------------------------- pure-JAX reference ----------------------------

def _ref_conv(x, w, b):
    # x: (N, Cin, H, W), w: (Cout, Cin, 4, 4), stride=2, padding=1
    N, Cin, H, W = x.shape
    Cout = w.shape[0]
    Ho, Wo = H // 2, W // 2
    xp = jnp.pad(x, ((0, 0), (0, 0), (1, 1), (1, 1)))
    out = jnp.zeros((N, Cout, Ho, Wo), jnp.float32)
    for ky in range(4):
        for kx in range(4):
            patch = xp[:, :, ky:ky + 2 * Ho:2, kx:kx + 2 * Wo:2]
            out = out + jnp.einsum("nchw,oc->nohw", patch, w[:, :, ky, kx],
                                   precision=jax.lax.Precision.HIGHEST)
    return out + b[None, :, None, None]


def _ref_forward(x_nchw, params):
    h = x_nchw
    for (w, b) in params["convs_pt"]:
        h = jnp.maximum(_ref_conv(h, w, b), 0.0)
    h = h.reshape(h.shape[0], -1)          # PyTorch view: CHW-flatten
    return (jnp.dot(h, params["dense_w_pt"].T,
                    precision=jax.lax.Precision.HIGHEST)
            + params["dense_b"])


# ---------------------------------- main ------------------------------------

if __name__ == "__main__":
    channels = [8, 16, 32]
    input_shape = (3, 16, 16)   # (C0, H0, W0)
    latent_dim = 16
    batch = 2

    key = jax.random.PRNGKey(0)
    pkey, xkey = jax.random.split(key)
    params = init_params(pkey, channels, input_shape, latent_dim)
    kparams = prepare_kernel_params(params)
    x = jax.random.normal(xkey, (batch,) + input_shape, jnp.float32)

    out = jax.block_until_ready(conv_encoder_forward(x, kparams))
    ref = jax.block_until_ready(_ref_forward(x, params))

    assert out.shape == (batch, latent_dim), out.shape
    # Kernel uses bf16 MXU operands with f32 accumulation -> loose tolerance.
    assert jnp.allclose(out, ref, atol=5e-2, rtol=5e-2), float(
        jnp.max(jnp.abs(out - ref)))

    print("KERNEL_OK")
</pallas_src>

<mosaic_0001>
module attributes {stable_mosaic.version = 11 : i64} {
  func.func @_conv_kernel(%arg0: i32, %arg1: memref<1x8x8x12xf32, #tpu.memory_space<vmem>>, %arg2: memref<48x8xbf16, #tpu.memory_space<vmem>>, %arg3: memref<1x8xf32, #tpu.memory_space<vmem>>, %arg4: memref<1x8x8x8xf32, #tpu.memory_space<vmem>>, %arg5: memref<10x10x12xf32, #tpu.memory_space<vmem>>) attributes {dimension_semantics = [#tpu.dimension_semantics<parallel>], iteration_bounds = array<i64: 2>, scalar_prefetch = 0 : i64, scratch_operands = 1 : i64, tpu.core_type = #tpu.core_type<tc>, window_params = [{transform_indices = @transform_0, window_bounds = array<i64: 1, 8, 8, 12>}, {pipeline_mode = #tpu.pipeline_mode<synchronous>, transform_indices = @transform_1, window_bounds = array<i64: 48, 8>}, {pipeline_mode = #tpu.pipeline_mode<synchronous>, transform_indices = @transform_2, window_bounds = array<i64: 1, 8>}, {transform_indices = @transform_3, window_bounds = array<i64: 1, 8, 8, 8>}]} {
    %cst = arith.constant 0.000000e+00 : f32
    %0 = vector.broadcast %cst : f32 to vector<10x10x12xf32>
    %c0 = arith.constant 0 : index
    %c0_0 = arith.constant 0 : index
    %c0_1 = arith.constant 0 : index
    %1 = vector.load %arg5[%c0, %c0_0, %c0_1] : memref<10x10x12xf32, #tpu.memory_space<vmem>>, vector<10x10x12xf32>
    tpu.vector_store %arg5[%c0, %c0_0, %c0_1], %0 {strides = array<i32>} : memref<10x10x12xf32, #tpu.memory_space<vmem>>, vector<10x10x12xf32>,
    %c0_2 = arith.constant 0 : index
    %c0_3 = arith.constant 0 : index
    %c0_4 = arith.constant 0 : index
    %c0_5 = arith.constant 0 : index
    %2 = vector.load %arg1[%c0_2, %c0_3, %c0_4, %c0_5] : memref<1x8x8x12xf32, #tpu.memory_space<vmem>>, vector<1x8x8x12xf32>
    %3 = vector.shape_cast %2 : vector<1x8x8x12xf32> to vector<8x8x12xf32>
    %c1 = arith.constant 1 : index
    %c1_6 = arith.constant 1 : index
    %c0_7 = arith.constant 0 : index
    %4 = vector.load %arg5[%c1, %c1_6, %c0_7] : memref<10x10x12xf32, #tpu.memory_space<vmem>>, vector<8x8x12xf32>
    tpu.vector_store %arg5[%c1, %c1_6, %c0_7], %3 {strides = array<i32>} : memref<10x10x12xf32, #tpu.memory_space<vmem>>, vector<8x8x12xf32>,
    %c0_8 = arith.constant 0 : index
    %c0_9 = arith.constant 0 : index
    %c9 = arith.constant 9 : index
    %5 = vector.load %arg5[%c0_8, %c0_9, %c9] : memref<10x10x12xf32, #tpu.memory_space<vmem>>, vector<8x8x3xf32>
    %c0_10 = arith.constant 0 : index
    %c1_11 = arith.constant 1 : index
    %c6 = arith.constant 6 : index
    %6 = vector.load %arg5[%c0_10, %c1_11, %c6] : memref<10x10x12xf32, #tpu.memory_space<vmem>>, vector<8x8x3xf32>
    %c0_12 = arith.constant 0 : index
    %c1_13 = arith.constant 1 : index
    %c9_14 = arith.constant 9 : index
    %7 = vector.load %arg5[%c0_12, %c1_13, %c9_14] : memref<10x10x12xf32, #tpu.memory_space<vmem>>, vector<8x8x3xf32>
    %c0_15 = arith.constant 0 : index
    %c2 = arith.constant 2 : index
    %c6_16 = arith.constant 6 : index
    %8 = vector.load %arg5[%c0_15, %c2, %c6_16] : memref<10x10x12xf32, #tpu.memory_space<vmem>>, vector<8x8x3xf32>
    %c1_17 = arith.constant 1 : index
    %c0_18 = arith.constant 0 : index
    %c3 = arith.constant 3 : index
    %9 = vector.load %arg5[%c1_17, %c0_18, %c3] : memref<10x10x12xf32, #tpu.memory_space<vmem>>, vector<8x8x3xf32>
    %c1_19 = arith.constant 1 : index
    %c1_20 = arith.constant 1 : index
    %c0_21 = arith.constant 0 : index
    %10 = vector.load %arg5[%c1_19, %c1_20, %c0_21] : memref<10x10x12xf32, #tpu.memory_space<vmem>>, vector<8x8x3xf32>
    %c1_22 = arith.constant 1 : index
    %c1_23 = arith.constant 1 : index
    %c3_24 = arith.constant 3 : index
    %11 = vector.load %arg5[%c1_22, %c1_23, %c3_24] : memref<10x10x12xf32, #tpu.memory_space<vmem>>, vector<8x8x3xf32>
    %c1_25 = arith.constant 1 : index
    %c2_26 = arith.constant 2 : index
    %c0_27 = arith.constant 0 : index
    %12 = vector.load %arg5[%c1_25, %c2_26, %c0_27] : memref<10x10x12xf32, #tpu.memory_space<vmem>>, vector<8x8x3xf32>
    %c1_28 = arith.constant 1 : index
    %c0_29 = arith.constant 0 : index
    %c9_30 = arith.constant 9 : index
    %13 = vector.load %arg5[%c1_28, %c0_29, %c9_30] : memref<10x10x12xf32, #tpu.memory_space<vmem>>, vector<8x8x3xf32>
    %c1_31 = arith.constant 1 : index
    %c1_32 = arith.constant 1 : index
    %c6_33 = arith.constant 6 : index
    %14 = vector.load %arg5[%c1_31, %c1_32, %c6_33] : memref<10x10x12xf32, #tpu.memory_space<vmem>>, vector<8x8x3xf32>
    %c1_34 = arith.constant 1 : index
    %c1_35 = arith.constant 1 : index
    %c9_36 = arith.constant 9 : index
    %15 = vector.load %arg5[%c1_34, %c1_35, %c9_36] : memref<10x10x12xf32, #tpu.memory_space<vmem>>, vector<8x8x3xf32>
    %c1_37 = arith.constant 1 : index
    %c2_38 = arith.constant 2 : index
    %c6_39 = arith.constant 6 : index
    %16 = vector.load %arg5[%c1_37, %c2_38, %c6_39] : memref<10x10x12xf32, #tpu.memory_space<vmem>>, vector<8x8x3xf32>
    %c2_40 = arith.constant 2 : index
    %c0_41 = arith.constant 0 : index
    %c3_42 = arith.constant 3 : index
    %17 = vector.load %arg5[%c2_40, %c0_41, %c3_42] : memref<10x10x12xf32, #tpu.memory_space<vmem>>, vector<8x8x3xf32>
    %c2_43 = arith.constant 2 : index
    %c1_44 = arith.constant 1 : index
    %c0_45 = arith.constant 0 : index
    %18 = vector.load %arg5[%c2_43, %c1_44, %c0_45] : memref<10x10x12xf32, #tpu.memory_space<vmem>>, vector<8x8x3xf32>
    %c2_46 = arith.constant 2 : index
    %c1_47 = arith.constant 1 : index
    %c3_48 = arith.constant 3 : index
    %19 = vector.load %arg5[%c2_46, %c1_47, %c3_48] : memref<10x10x12xf32, #tpu.memory_space<vmem>>, vector<8x8x3xf32>
    %c2_49 = arith.constant 2 : index
    %c2_50 = arith.constant 2 : index
    %c0_51 = arith.constant 0 : index
    %20 = vector.load %arg5[%c2_49, %c2_50, %c0_51] : memref<10x10x12xf32, #tpu.memory_space<vmem>>, vector<8x8x3xf32>
    %21 = tpu.concatenate %5, %6, %7, %8, %9, %10, %11, %12, %13, %14, %15, %16, %17, %18, %19, %20 in 2 : vector<8x8x3xf32>, vector<8x8x3xf32>, vector<8x8x3xf32>, vector<8x8x3xf32>, vector<8x8x3xf32>, vector<8x8x3xf32>, vector<8x8x3xf32>, vector<8x8x3xf32>, vector<8x8x3xf32>, vector<8x8x3xf32>, vector<8x8x3xf32>, vector<8x8x3xf32>, vector<8x8x3xf32>, vector<8x8x3xf32>, vector<8x8x3xf32>, vector<8x8x3xf32> -> vector<8x8x48xf32>
    %22 = vector.shape_cast %21 : vector<8x8x48xf32> to vector<64x48xf32>
    %23 = arith.truncf %22 : vector<64x48xf32> to vector<64x48xbf16>
    %c0_52 = arith.constant 0 : index
    %c0_53 = arith.constant 0 : index
    %24 = vector.load %arg2[%c0_52, %c0_53] : memref<48x8xbf16, #tpu.memory_space<vmem>>, vector<48x8xbf16>
    %cst_54 = arith.constant dense<0.000000e+00> : vector<64x8xf32>
    %25 = tpu.matmul %23, %24, %cst_54 {dimension_numbers = #tpu.dot_dimension_numbers<[1], [0], [0], [1], [0, 0, 1, 1], [], []>} : vector<64x48xbf16>, vector<48x8xbf16>, vector<64x8xf32> -> vector<64x8xf32>
    %c0_55 = arith.constant 0 : index
    %c0_56 = arith.constant 0 : index
    %26 = vector.load %arg3[%c0_55, %c0_56] : memref<1x8xf32, #tpu.memory_space<vmem>>, vector<1x8xf32>
    %27 = vector.broadcast %26 : vector<1x8xf32> to vector<64x8xf32>
    %28 = arith.addf %25, %27 : vector<64x8xf32>
    %cst_57 = arith.constant 0.000000e+00 : f32
    %29 = vector.broadcast %cst_57 : f32 to vector<64x8xf32>
    %30 = arith.maximumf %28, %29 : vector<64x8xf32>
    %31 = vector.shape_cast %30 : vector<64x8xf32> to vector<8x8x8xf32>
    %c0_58 = arith.constant 0 : index
    %c0_59 = arith.constant 0 : index
    %c0_60 = arith.constant 0 : index
    %c0_61 = arith.constant 0 : index
    %32 = vector.load %arg4[%c0_58, %c0_59, %c0_60, %c0_61] : memref<1x8x8x8xf32, #tpu.memory_space<vmem>>, vector<1x8x8x8xf32>
    %33 = vector.shape_cast %32 : vector<1x8x8x8xf32> to vector<8x8x8xf32>
    %34 = vector.shape_cast %31 : vector<8x8x8xf32> to vector<1x8x8x8xf32>
    tpu.vector_store %arg4[%c0_58, %c0_59, %c0_60, %c0_61], %34 {strides = array<i32>} : memref<1x8x8x8xf32, #tpu.memory_space<vmem>>, vector<1x8x8x8xf32>,
    return
  }
  func.func @transform_0(%arg0: i32) -> (i32, i32, i32, i32) {
    %c0_i32 = arith.constant 0 : i32
    %c0_i32_0 = arith.constant 0 : i32
    %c0_i32_1 = arith.constant 0 : i32
    %c0_i32_2 = arith.constant 0 : i32
    return %arg0, %c0_i32, %c0_i32_0, %c0_i32_1 : i32, i32, i32, i32
  }
  func.func @transform_1(%arg0: i32) -> (i32, i32) {
    %c0_i32 = arith.constant 0 : i32
    %c0_i32_0 = arith.constant 0 : i32
    %c0_i32_1 = arith.constant 0 : i32
    return %c0_i32, %c0_i32_0 : i32, i32
  }
  func.func @transform_2(%arg0: i32) -> (i32, i32) {
    %c0_i32 = arith.constant 0 : i32
    %c0_i32_0 = arith.constant 0 : i32
    %c0_i32_1 = arith.constant 0 : i32
    return %c0_i32, %c0_i32_0 : i32, i32
  }
  func.func @transform_3(%arg0: i32) -> (i32, i32, i32, i32) {
    %c0_i32 = arith.constant 0 : i32
    %c0_i32_0 = arith.constant 0 : i32
    %c0_i32_1 = arith.constant 0 : i32
    %c0_i32_2 = arith.constant 0 : i32
    return %arg0, %c0_i32, %c0_i32_0, %c0_i32_1 : i32, i32, i32, i32
  }
}

module attributes {stable_mosaic.version = 11 : i64} {
  func.func @_conv_kernel(%arg0: i32, %arg1: memref<1x4x4x32xf32, #tpu.memory_space<vmem>>, %arg2: memref<128x16xbf16, #tpu.memory_space<vmem>>, %arg3: memref<1x16xf32, #tpu.memory_space<vmem>>, %arg4: memref<1x4x4x16xf32, #tpu.memory_space<vmem>>, %arg5: memref<6x6x32xf32, #tpu.memory_space<vmem>>) attributes {dimension_semantics = [#tpu.dimension_semantics<parallel>], iteration_bounds = array<i64: 2>, scalar_prefetch = 0 : i64, scratch_operands = 1 : i64, tpu.core_type = #tpu.core_type<tc>, window_params = [{transform_indices = @transform_0, window_bounds = array<i64: 1, 4, 4, 32>}, {pipeline_mode = #tpu.pipeline_mode<synchronous>, transform_indices = @transform_1, window_bounds = array<i64: 128, 16>}, {pipeline_mode = #tpu.pipeline_mode<synchronous>, transform_indices = @transform_2, window_bounds = array<i64: 1, 16>}, {transform_indices = @transform_3, window_bounds = array<i64: 1, 4, 4, 16>}]} {
    %cst = arith.constant 0.000000e+00 : f32
    %0 = vector.broadcast %cst : f32 to vector<6x6x32xf32>
    %c0 = arith.constant 0 : index
    %c0_0 = arith.constant 0 : index
    %c0_1 = arith.constant 0 : index
    %1 = vector.load %arg5[%c0, %c0_0, %c0_1] : memref<6x6x32xf32, #tpu.memory_space<vmem>>, vector<6x6x32xf32>
    tpu.vector_store %arg5[%c0, %c0_0, %c0_1], %0 {strides = array<i32>} : memref<6x6x32xf32, #tpu.memory_space<vmem>>, vector<6x6x32xf32>,
    %c0_2 = arith.constant 0 : index
    %c0_3 = arith.constant 0 : index
    %c0_4 = arith.constant 0 : index
    %c0_5 = arith.constant 0 : index
    %2 = vector.load %arg1[%c0_2, %c0_3, %c0_4, %c0_5] : memref<1x4x4x32xf32, #tpu.memory_space<vmem>>, vector<1x4x4x32xf32>
    %3 = vector.shape_cast %2 : vector<1x4x4x32xf32> to vector<4x4x32xf32>
    %c1 = arith.constant 1 : index
    %c1_6 = arith.constant 1 : index
    %c0_7 = arith.constant 0 : index
    %4 = vector.load %arg5[%c1, %c1_6, %c0_7] : memref<6x6x32xf32, #tpu.memory_space<vmem>>, vector<4x4x32xf32>
    tpu.vector_store %arg5[%c1, %c1_6, %c0_7], %3 {strides = array<i32>} : memref<6x6x32xf32, #tpu.memory_space<vmem>>, vector<4x4x32xf32>,
    %c0_8 = arith.constant 0 : index
    %c0_9 = arith.constant 0 : index
    %c24 = arith.constant 24 : index
    %5 = vector.load %arg5[%c0_8, %c0_9, %c24] : memref<6x6x32xf32, #tpu.memory_space<vmem>>, vector<4x4x8xf32>
    %c0_10 = arith.constant 0 : index
    %c1_11 = arith.constant 1 : index
    %c16 = arith.constant 16 : index
    %6 = vector.load %arg5[%c0_10, %c1_11, %c16] : memref<6x6x32xf32, #tpu.memory_space<vmem>>, vector<4x4x8xf32>
    %c0_12 = arith.constant 0 : index
    %c1_13 = arith.constant 1 : index
    %c24_14 = arith.constant 24 : index
    %7 = vector.load %arg5[%c0_12, %c1_13, %c24_14] : memref<6x6x32xf32, #tpu.memory_space<vmem>>, vector<4x4x8xf32>
    %c0_15 = arith.constant 0 : index
    %c2 = arith.constant 2 : index
    %c16_16 = arith.constant 16 : index
    %8 = vector.load %arg5[%c0_15, %c2, %c16_16] : memref<6x6x32xf32, #tpu.memory_space<vmem>>, vector<4x4x8xf32>
    %c1_17 = arith.constant 1 : index
    %c0_18 = arith.constant 0 : index
    %c8 = arith.constant 8 : index
    %9 = vector.load %arg5[%c1_17, %c0_18, %c8] : memref<6x6x32xf32, #tpu.memory_space<vmem>>, vector<4x4x8xf32>
    %c1_19 = arith.constant 1 : index
    %c1_20 = arith.constant 1 : index
    %c0_21 = arith.constant 0 : index
    %10 = vector.load %arg5[%c1_19, %c1_20, %c0_21] : memref<6x6x32xf32, #tpu.memory_space<vmem>>, vector<4x4x8xf32>
    %c1_22 = arith.constant 1 : index
    %c1_23 = arith.constant 1 : index
    %c8_24 = arith.constant 8 : index
    %11 = vector.load %arg5[%c1_22, %c1_23, %c8_24] : memref<6x6x32xf32, #tpu.memory_space<vmem>>, vector<4x4x8xf32>
    %c1_25 = arith.constant 1 : index
    %c2_26 = arith.constant 2 : index
    %c0_27 = arith.constant 0 : index
    %12 = vector.load %arg5[%c1_25, %c2_26, %c0_27] : memref<6x6x32xf32, #tpu.memory_space<vmem>>, vector<4x4x8xf32>
    %c1_28 = arith.constant 1 : index
    %c0_29 = arith.constant 0 : index
    %c24_30 = arith.constant 24 : index
    %13 = vector.load %arg5[%c1_28, %c0_29, %c24_30] : memref<6x6x32xf32, #tpu.memory_space<vmem>>, vector<4x4x8xf32>
    %c1_31 = arith.constant 1 : index
    %c1_32 = arith.constant 1 : index
    %c16_33 = arith.constant 16 : index
    %14 = vector.load %arg5[%c1_31, %c1_32, %c16_33] : memref<6x6x32xf32, #tpu.memory_space<vmem>>, vector<4x4x8xf32>
    %c1_34 = arith.constant 1 : index
    %c1_35 = arith.constant 1 : index
    %c24_36 = arith.constant 24 : index
    %15 = vector.load %arg5[%c1_34, %c1_35, %c24_36] : memref<6x6x32xf32, #tpu.memory_space<vmem>>, vector<4x4x8xf32>
    %c1_37 = arith.constant 1 : index
    %c2_38 = arith.constant 2 : index
    %c16_39 = arith.constant 16 : index
    %16 = vector.load %arg5[%c1_37, %c2_38, %c16_39] : memref<6x6x32xf32, #tpu.memory_space<vmem>>, vector<4x4x8xf32>
    %c2_40 = arith.constant 2 : index
    %c0_41 = arith.constant 0 : index
    %c8_42 = arith.constant 8 : index
    %17 = vector.load %arg5[%c2_40, %c0_41, %c8_42] : memref<6x6x32xf32, #tpu.memory_space<vmem>>, vector<4x4x8xf32>
    %c2_43 = arith.constant 2 : index
    %c1_44 = arith.constant 1 : index
    %c0_45 = arith.constant 0 : index
    %18 = vector.load %arg5[%c2_43, %c1_44, %c0_45] : memref<6x6x32xf32, #tpu.memory_space<vmem>>, vector<4x4x8xf32>
    %c2_46 = arith.constant 2 : index
    %c1_47 = arith.constant 1 : index
    %c8_48 = arith.constant 8 : index
    %19 = vector.load %arg5[%c2_46, %c1_47, %c8_48] : memref<6x6x32xf32, #tpu.memory_space<vmem>>, vector<4x4x8xf32>
    %c2_49 = arith.constant 2 : index
    %c2_50 = arith.constant 2 : index
    %c0_51 = arith.constant 0 : index
    %20 = vector.load %arg5[%c2_49, %c2_50, %c0_51] : memref<6x6x32xf32, #tpu.memory_space<vmem>>, vector<4x4x8xf32>
    %21 = tpu.concatenate %5, %6, %7, %8, %9, %10, %11, %12, %13, %14, %15, %16, %17, %18, %19, %20 in 2 : vector<4x4x8xf32>, vector<4x4x8xf32>, vector<4x4x8xf32>, vector<4x4x8xf32>, vector<4x4x8xf32>, vector<4x4x8xf32>, vector<4x4x8xf32>, vector<4x4x8xf32>, vector<4x4x8xf32>, vector<4x4x8xf32>, vector<4x4x8xf32>, vector<4x4x8xf32>, vector<4x4x8xf32>, vector<4x4x8xf32>, vector<4x4x8xf32>, vector<4x4x8xf32> -> vector<4x4x128xf32>
    %22 = vector.shape_cast %21 : vector<4x4x128xf32> to vector<16x128xf32>
    %23 = arith.truncf %22 : vector<16x128xf32> to vector<16x128xbf16>
    %c0_52 = arith.constant 0 : index
    %c0_53 = arith.constant 0 : index
    %24 = vector.load %arg2[%c0_52, %c0_53] : memref<128x16xbf16, #tpu.memory_space<vmem>>, vector<128x16xbf16>
    %cst_54 = arith.constant dense<0.000000e+00> : vector<16x16xf32>
    %25 = tpu.matmul %23, %24, %cst_54 {dimension_numbers = #tpu.dot_dimension_numbers<[1], [0], [0], [1], [0, 0, 1, 1], [], []>} : vector<16x128xbf16>, vector<128x16xbf16>, vector<16x16xf32> -> vector<16x16xf32>
    %c0_55 = arith.constant 0 : index
    %c0_56 = arith.constant 0 : index
    %26 = vector.load %arg3[%c0_55, %c0_56] : memref<1x16xf32, #tpu.memory_space<vmem>>, vector<1x16xf32>
    %27 = vector.broadcast %26 : vector<1x16xf32> to vector<16x16xf32>
    %28 = arith.addf %25, %27 : vector<16x16xf32>
    %cst_57 = arith.constant 0.000000e+00 : f32
    %29 = vector.broadcast %cst_57 : f32 to vector<16x16xf32>
    %30 = arith.maximumf %28, %29 : vector<16x16xf32>
    %31 = vector.shape_cast %30 : vector<16x16xf32> to vector<4x4x16xf32>
    %c0_58 = arith.constant 0 : index
    %c0_59 = arith.constant 0 : index
    %c0_60 = arith.constant 0 : index
    %c0_61 = arith.constant 0 : index
    %32 = vector.load %arg4[%c0_58, %c0_59, %c0_60, %c0_61] : memref<1x4x4x16xf32, #tpu.memory_space<vmem>>, vector<1x4x4x16xf32>
    %33 = vector.shape_cast %32 : vector<1x4x4x16xf32> to vector<4x4x16xf32>
    %34 = vector.shape_cast %31 : vector<4x4x16xf32> to vector<1x4x4x16xf32>
    tpu.vector_store %arg4[%c0_58, %c0_59, %c0_60, %c0_61], %34 {strides = array<i32>} : memref<1x4x4x16xf32, #tpu.memory_space<vmem>>, vector<1x4x4x16xf32>,
    return
  }
  func.func @transform_0(%arg0: i32) -> (i32, i32, i32, i32) {
    %c0_i32 = arith.constant 0 : i32
    %c0_i32_0 = arith.constant 0 : i32
    %c0_i32_1 = arith.constant 0 : i32
    %c0_i32_2 = arith.constant 0 : i32
    return %arg0, %c0_i32, %c0_i32_0, %c0_i32_1 : i32, i32, i32, i32
  }
  func.func @transform_1(%arg0: i32) -> (i32, i32) {
    %c0_i32 = arith.constant 0 : i32
    %c0_i32_0 = arith.constant 0 : i32
    %c0_i32_1 = arith.constant 0 : i32
    return %c0_i32, %c0_i32_0 : i32, i32
  }
  func.func @transform_2(%arg0: i32) -> (i32, i32) {
    %c0_i32 = arith.constant 0 : i32
    %c0_i32_0 = arith.constant 0 : i32
    %c0_i32_1 = arith.constant 0 : i32
    return %c0_i32, %c0_i32_0 : i32, i32
  }
  func.func @transform_3(%arg0: i32) -> (i32, i32, i32, i32) {
    %c0_i32 = arith.constant 0 : i32
    %c0_i32_0 = arith.constant 0 : i32
    %c0_i32_1 = arith.constant 0 : i32
    %c0_i32_2 = arith.constant 0 : i32
    return %arg0, %c0_i32, %c0_i32_0, %c0_i32_1 : i32, i32, i32, i32
  }
}

module attributes {stable_mosaic.version = 11 : i64} {
  func.func @_conv_kernel(%arg0: i32, %arg1: memref<1x2x2x64xf32, #tpu.memory_space<vmem>>, %arg2: memref<256x32xbf16, #tpu.memory_space<vmem>>, %arg3: memref<1x32xf32, #tpu.memory_space<vmem>>, %arg4: memref<1x2x2x32xf32, #tpu.memory_space<vmem>>, %arg5: memref<4x4x64xf32, #tpu.memory_space<vmem>>) attributes {dimension_semantics = [#tpu.dimension_semantics<parallel>], iteration_bounds = array<i64: 2>, scalar_prefetch = 0 : i64, scratch_operands = 1 : i64, tpu.core_type = #tpu.core_type<tc>, window_params = [{transform_indices = @transform_0, window_bounds = array<i64: 1, 2, 2, 64>}, {pipeline_mode = #tpu.pipeline_mode<synchronous>, transform_indices = @transform_1, window_bounds = array<i64: 256, 32>}, {pipeline_mode = #tpu.pipeline_mode<synchronous>, transform_indices = @transform_2, window_bounds = array<i64: 1, 32>}, {transform_indices = @transform_3, window_bounds = array<i64: 1, 2, 2, 32>}]} {
    %cst = arith.constant 0.000000e+00 : f32
    %0 = vector.broadcast %cst : f32 to vector<4x4x64xf32>
    %c0 = arith.constant 0 : index
    %c0_0 = arith.constant 0 : index
    %c0_1 = arith.constant 0 : index
    %1 = vector.load %arg5[%c0, %c0_0, %c0_1] : memref<4x4x64xf32, #tpu.memory_space<vmem>>, vector<4x4x64xf32>
    tpu.vector_store %arg5[%c0, %c0_0, %c0_1], %0 {strides = array<i32>} : memref<4x4x64xf32, #tpu.memory_space<vmem>>, vector<4x4x64xf32>,
    %c0_2 = arith.constant 0 : index
    %c0_3 = arith.constant 0 : index
    %c0_4 = arith.constant 0 : index
    %c0_5 = arith.constant 0 : index
    %2 = vector.load %arg1[%c0_2, %c0_3, %c0_4, %c0_5] : memref<1x2x2x64xf32, #tpu.memory_space<vmem>>, vector<1x2x2x64xf32>
    %3 = vector.shape_cast %2 : vector<1x2x2x64xf32> to vector<2x2x64xf32>
    %c1 = arith.constant 1 : index
    %c1_6 = arith.constant 1 : index
    %c0_7 = arith.constant 0 : index
    %4 = vector.load %arg5[%c1, %c1_6, %c0_7] : memref<4x4x64xf32, #tpu.memory_space<vmem>>, vector<2x2x64xf32>
    tpu.vector_store %arg5[%c1, %c1_6, %c0_7], %3 {strides = array<i32>} : memref<4x4x64xf32, #tpu.memory_space<vmem>>, vector<2x2x64xf32>,
    %c0_8 = arith.constant 0 : index
    %c0_9 = arith.constant 0 : index
    %c48 = arith.constant 48 : index
    %5 = vector.load %arg5[%c0_8, %c0_9, %c48] : memref<4x4x64xf32, #tpu.memory_space<vmem>>, vector<2x2x16xf32>
    %c0_10 = arith.constant 0 : index
    %c1_11 = arith.constant 1 : index
    %c32 = arith.constant 32 : index
    %6 = vector.load %arg5[%c0_10, %c1_11, %c32] : memref<4x4x64xf32, #tpu.memory_space<vmem>>, vector<2x2x16xf32>
    %c0_12 = arith.constant 0 : index
    %c1_13 = arith.constant 1 : index
    %c48_14 = arith.constant 48 : index
    %7 = vector.load %arg5[%c0_12, %c1_13, %c48_14] : memref<4x4x64xf32, #tpu.memory_space<vmem>>, vector<2x2x16xf32>
    %c0_15 = arith.constant 0 : index
    %c2 = arith.constant 2 : index
    %c32_16 = arith.constant 32 : index
    %8 = vector.load %arg5[%c0_15, %c2, %c32_16] : memref<4x4x64xf32, #tpu.memory_space<vmem>>, vector<2x2x16xf32>
    %c1_17 = arith.constant 1 : index
    %c0_18 = arith.constant 0 : index
    %c16 = arith.constant 16 : index
    %9 = vector.load %arg5[%c1_17, %c0_18, %c16] : memref<4x4x64xf32, #tpu.memory_space<vmem>>, vector<2x2x16xf32>
    %c1_19 = arith.constant 1 : index
    %c1_20 = arith.constant 1 : index
    %c0_21 = arith.constant 0 : index
    %10 = vector.load %arg5[%c1_19, %c1_20, %c0_21] : memref<4x4x64xf32, #tpu.memory_space<vmem>>, vector<2x2x16xf32>
    %c1_22 = arith.constant 1 : index
    %c1_23 = arith.constant 1 : index
    %c16_24 = arith.constant 16 : index
    %11 = vector.load %arg5[%c1_22, %c1_23, %c16_24] : memref<4x4x64xf32, #tpu.memory_space<vmem>>, vector<2x2x16xf32>
    %c1_25 = arith.constant 1 : index
    %c2_26 = arith.constant 2 : index
    %c0_27 = arith.constant 0 : index
    %12 = vector.load %arg5[%c1_25, %c2_26, %c0_27] : memref<4x4x64xf32, #tpu.memory_space<vmem>>, vector<2x2x16xf32>
    %c1_28 = arith.constant 1 : index
    %c0_29 = arith.constant 0 : index
    %c48_30 = arith.constant 48 : index
    %13 = vector.load %arg5[%c1_28, %c0_29, %c48_30] : memref<4x4x64xf32, #tpu.memory_space<vmem>>, vector<2x2x16xf32>
    %c1_31 = arith.constant 1 : index
    %c1_32 = arith.constant 1 : index
    %c32_33 = arith.constant 32 : index
    %14 = vector.load %arg5[%c1_31, %c1_32, %c32_33] : memref<4x4x64xf32, #tpu.memory_space<vmem>>, vector<2x2x16xf32>
    %c1_34 = arith.constant 1 : index
    %c1_35 = arith.constant 1 : index
    %c48_36 = arith.constant 48 : index
    %15 = vector.load %arg5[%c1_34, %c1_35, %c48_36] : memref<4x4x64xf32, #tpu.memory_space<vmem>>, vector<2x2x16xf32>
    %c1_37 = arith.constant 1 : index
    %c2_38 = arith.constant 2 : index
    %c32_39 = arith.constant 32 : index
    %16 = vector.load %arg5[%c1_37, %c2_38, %c32_39] : memref<4x4x64xf32, #tpu.memory_space<vmem>>, vector<2x2x16xf32>
    %c2_40 = arith.constant 2 : index
    %c0_41 = arith.constant 0 : index
    %c16_42 = arith.constant 16 : index
    %17 = vector.load %arg5[%c2_40, %c0_41, %c16_42] : memref<4x4x64xf32, #tpu.memory_space<vmem>>, vector<2x2x16xf32>
    %c2_43 = arith.constant 2 : index
    %c1_44 = arith.constant 1 : index
    %c0_45 = arith.constant 0 : index
    %18 = vector.load %arg5[%c2_43, %c1_44, %c0_45] : memref<4x4x64xf32, #tpu.memory_space<vmem>>, vector<2x2x16xf32>
    %c2_46 = arith.constant 2 : index
    %c1_47 = arith.constant 1 : index
    %c16_48 = arith.constant 16 : index
    %19 = vector.load %arg5[%c2_46, %c1_47, %c16_48] : memref<4x4x64xf32, #tpu.memory_space<vmem>>, vector<2x2x16xf32>
    %c2_49 = arith.constant 2 : index
    %c2_50 = arith.constant 2 : index
    %c0_51 = arith.constant 0 : index
    %20 = vector.load %arg5[%c2_49, %c2_50, %c0_51] : memref<4x4x64xf32, #tpu.memory_space<vmem>>, vector<2x2x16xf32>
    %21 = tpu.concatenate %5, %6, %7, %8, %9, %10, %11, %12, %13, %14, %15, %16, %17, %18, %19, %20 in 2 : vector<2x2x16xf32>, vector<2x2x16xf32>, vector<2x2x16xf32>, vector<2x2x16xf32>, vector<2x2x16xf32>, vector<2x2x16xf32>, vector<2x2x16xf32>, vector<2x2x16xf32>, vector<2x2x16xf32>, vector<2x2x16xf32>, vector<2x2x16xf32>, vector<2x2x16xf32>, vector<2x2x16xf32>, vector<2x2x16xf32>, vector<2x2x16xf32>, vector<2x2x16xf32> -> vector<2x2x256xf32>
    %22 = vector.shape_cast %21 : vector<2x2x256xf32> to vector<4x256xf32>
    %23 = arith.truncf %22 : vector<4x256xf32> to vector<4x256xbf16>
    %c0_52 = arith.constant 0 : index
    %c0_53 = arith.constant 0 : index
    %24 = vector.load %arg2[%c0_52, %c0_53] : memref<256x32xbf16, #tpu.memory_space<vmem>>, vector<256x32xbf16>
    %cst_54 = arith.constant dense<0.000000e+00> : vector<4x32xf32>
    %25 = tpu.matmul %23, %24, %cst_54 {dimension_numbers = #tpu.dot_dimension_numbers<[1], [0], [0], [1], [0, 0, 1, 1], [], []>} : vector<4x256xbf16>, vector<256x32xbf16>, vector<4x32xf32> -> vector<4x32xf32>
    %c0_55 = arith.constant 0 : index
    %c0_56 = arith.constant 0 : index
    %26 = vector.load %arg3[%c0_55, %c0_56] : memref<1x32xf32, #tpu.memory_space<vmem>>, vector<1x32xf32>
    %27 = vector.broadcast %26 : vector<1x32xf32> to vector<4x32xf32>
    %28 = arith.addf %25, %27 : vector<4x32xf32>
    %cst_57 = arith.constant 0.000000e+00 : f32
    %29 = vector.broadcast %cst_57 : f32 to vector<4x32xf32>
    %30 = arith.maximumf %28, %29 : vector<4x32xf32>
    %31 = vector.shape_cast %30 : vector<4x32xf32> to vector<2x2x32xf32>
    %c0_58 = arith.constant 0 : index
    %c0_59 = arith.constant 0 : index
    %c0_60 = arith.constant 0 : index
    %c0_61 = arith.constant 0 : index
    %32 = vector.load %arg4[%c0_58, %c0_59, %c0_60, %c0_61] : memref<1x2x2x32xf32, #tpu.memory_space<vmem>>, vector<1x2x2x32xf32>
    %33 = vector.shape_cast %32 : vector<1x2x2x32xf32> to vector<2x2x32xf32>
    %34 = vector.shape_cast %31 : vector<2x2x32xf32> to vector<1x2x2x32xf32>
    tpu.vector_store %arg4[%c0_58, %c0_59, %c0_60, %c0_61], %34 {strides = array<i32>} : memref<1x2x2x32xf32, #tpu.memory_space<vmem>>, vector<1x2x2x32xf32>,
    return
  }
  func.func @transform_0(%arg0: i32) -> (i32, i32, i32, i32) {
    %c0_i32 = arith.constant 0 : i32
    %c0_i32_0 = arith.constant 0 : i32
    %c0_i32_1 = arith.constant 0 : i32
    %c0_i32_2 = arith.constant 0 : i32
    return %arg0, %c0_i32, %c0_i32_0, %c0_i32_1 : i32, i32, i32, i32
  }
  func.func @transform_1(%arg0: i32) -> (i32, i32) {
    %c0_i32 = arith.constant 0 : i32
    %c0_i32_0 = arith.constant 0 : i32
    %c0_i32_1 = arith.constant 0 : i32
    return %c0_i32, %c0_i32_0 : i32, i32
  }
  func.func @transform_2(%arg0: i32) -> (i32, i32) {
    %c0_i32 = arith.constant 0 : i32
    %c0_i32_0 = arith.constant 0 : i32
    %c0_i32_1 = arith.constant 0 : i32
    return %c0_i32, %c0_i32_0 : i32, i32
  }
  func.func @transform_3(%arg0: i32) -> (i32, i32, i32, i32) {
    %c0_i32 = arith.constant 0 : i32
    %c0_i32_0 = arith.constant 0 : i32
    %c0_i32_1 = arith.constant 0 : i32
    %c0_i32_2 = arith.constant 0 : i32
    return %arg0, %c0_i32, %c0_i32_0, %c0_i32_1 : i32, i32, i32, i32
  }
}

module attributes {stable_mosaic.version = 11 : i64} {
  func.func @_dense_kernel(%arg0: memref<2x128xf32, #tpu.memory_space<vmem>>, %arg1: memref<128x16xbf16, #tpu.memory_space<vmem>>, %arg2: memref<1x16xf32, #tpu.memory_space<vmem>>, %arg3: memref<2x16xf32, #tpu.memory_space<vmem>>) attributes {dimension_semantics = [], scalar_prefetch = 0 : i64, scratch_operands = 0 : i64, tpu.core_type = #tpu.core_type<tc>} {
    %c0 = arith.constant 0 : index
    %c0_0 = arith.constant 0 : index
    %0 = vector.load %arg0[%c0, %c0_0] : memref<2x128xf32, #tpu.memory_space<vmem>>, vector<2x128xf32>
    %1 = arith.truncf %0 : vector<2x128xf32> to vector<2x128xbf16>
    %c0_1 = arith.constant 0 : index
    %c0_2 = arith.constant 0 : index
    %2 = vector.load %arg1[%c0_1, %c0_2] : memref<128x16xbf16, #tpu.memory_space<vmem>>, vector<128x16xbf16>
    %cst = arith.constant dense<0.000000e+00> : vector<2x16xf32>
    %3 = tpu.matmul %1, %2, %cst {dimension_numbers = #tpu.dot_dimension_numbers<[1], [0], [0], [1], [0, 0, 1, 1], [], []>} : vector<2x128xbf16>, vector<128x16xbf16>, vector<2x16xf32> -> vector<2x16xf32>
    %c0_3 = arith.constant 0 : index
    %c0_4 = arith.constant 0 : index
    %4 = vector.load %arg2[%c0_3, %c0_4] : memref<1x16xf32, #tpu.memory_space<vmem>>, vector<1x16xf32>
    %5 = vector.broadcast %4 : vector<1x16xf32> to vector<2x16xf32>
    %6 = arith.addf %3, %5 : vector<2x16xf32>
    %c0_5 = arith.constant 0 : index
    %c0_6 = arith.constant 0 : index
    %7 = vector.load %arg3[%c0_5, %c0_6] : memref<2x16xf32, #tpu.memory_space<vmem>>, vector<2x16xf32>
    tpu.vector_store %arg3[%c0_5, %c0_6], %6 {strides = array<i32>} : memref<2x16xf32, #tpu.memory_space<vmem>>, vector<2x16xf32>,
    return
  }
}

</mosaic_0001>

<bundles_post_ra>
// kernel: conv_encoder_forward.5
= control target key start
LH: loop header
LB: loop body
LE: loop exit
PB: predicated region body
PF: predicated region fallthrough
CT: control target
= control target key end

     0   :  { %s785_s12 = smov 0   ;;  %s927_s0 = inlined_call_operand.vmem [shape: f32[2,4,4,32], index: 0, kind: input, shape index: {}]   ;;  %s928_s1 = inlined_call_operand.vmem [shape: bf16[128,16], index: 1, kind: input, shape index: {}]   ;;  %s929_s2 = inlined_call_operand.vmem [shape: f32[1,16], index: 2, kind: input, shape index: {}]   ;;  %s930_s3 = inlined_call_operand.vmem [shape: f32[2,4,4,16], index: 3, kind: output, shape index: {}]  }
   0x1 LB: > { %s670_s13 = sadd.s32 4294967295, %s753_s12   ;;  %p674_p0 = scmp.ge.s32.totalorder %s753_s12, 1  ;;  %s753_s12 = sphi %s785_s12, %s13_s12  }
   0x2   : > { %p137_p1 = scmp.lt.s32.totalorder %s753_s12, 3 }
   0x4   : > { %p138_p2 = pnand %p674_p0, %p137_p1 }
   0x5   : > { %vm172_vm0 = vcmask (!%p138_p2), 259072   ;;  %v755_v0 = vmov (!%p138_p2), 0.0   ;;  %p161_p3 = scmp.lt.s32.totalorder (!%p138_p2), %s670_s13, 1  ;;  %vm184_vm1 = vcmask (!%p138_p2), 257024   ;;  %s756_s18 = smov (!%p138_p2), 104   ;;  %v739_v29 = vld [vmem:[%s928_s1] sm:$0xff] (!%p138_p2)  }
   0x6   : > { %141 = sbr.rel (%p138_p2) target bundleno = 458 (0x1ca), region = 32  ;;  %173 = vst.msk [vmem:[#allocation2] sm:$0x3f] (!%p138_p2), %vm172_vm0, %v755_v0  ;;  %174 = vst.msk [vmem:[#allocation2 + $0x8] sm:$0x3f] (!%p138_p2), %vm172_vm0, %v755_v0  ;;  %701 = vmatprep.subr.bf16.mxu0 (!%p138_p2), %v755_v0  ;;  %s757_s19 = smov (!%p138_p2), 120  }
   0x7   : > { %175 = vst.msk [vmem:[#allocation2 + $0x10] sm:$0x3f] (!%p138_p2), %vm172_vm0, %v755_v0  ;;  %176 = vst.msk [vmem:[#allocation2 + $0x18] sm:$0x3f] (!%p138_p2), %vm172_vm0, %v755_v0  ;;  %s758_s20 = smov (!%p138_p2), 8   ;;  %s759_s21 = smov (!%p138_p2), 24   ;;  %702 = vmatpush3.bf16.msra.mxu0 (!%p138_p2), %v739_v29 }
   0x8   : > { %177 = vst.msk [vmem:[#allocation2 + $0x20] sm:$0x3f] (!%p138_p2), %vm172_vm0, %v755_v0  ;;  %178 = vst.msk [vmem:[#allocation2 + $0x28] sm:$0x3f] (!%p138_p2), %vm172_vm0, %v755_v0  ;;  %s760_s22 = smov (!%p138_p2), 40   ;;  %s761_s23 = smov (!%p138_p2), 56   ;;  %703 = vmatprep.subr.bf16.mxu0 (!%p138_p2), %v755_v0 }
   0x9   : > { %v740_v30 = vld [vmem:[%s928_s1 + $0x8] sm:$0xff] (!%p138_p2)   ;;  %s762_s28 = smov (!%p138_p2), 72   ;;  %v741_v31 = vld [vmem:[%s928_s1 + $0x10] sm:$0xff] (!%p138_p2)   ;;  %v742_v33 = vld [vmem:[%s928_s1 + $0x18] sm:$0xff] (!%p138_p2)   ;;  %s763_s6 = smov (!%p138_p2), 88   ;;  %vm764_vm2 = vmmov (!%p138_p2), 0  }
   0xa   : > { %v743_v35 = vld [vmem:[%s928_s1 + $0x20] sm:$0xff] (!%p138_p2)   ;;  %v744_v38 = vld [vmem:[%s928_s1 + $0x28] sm:$0xff] (!%p138_p2)   ;;  %v745_v41 = vld [vmem:[%s928_s1 + $0x30] sm:$0xff] (!%p138_p2)   ;;  %717 = vmatprep.mubr.msk.bf16.mxu0 (!%p138_p2), %vm764_vm2, %v755_v0  ;;  %vm406_vm3 = vcmask (!%p138_p2), 64512   ;;  %vm411_vm4 = vcmask (!%p138_p2), 130048   ;;  %vm416_vm5 = vcmask (!%p138_p2), 195584  }
   0xb   : > { %704 = vmatpush3.bf16.msra.mxu0 (!%p138_p2), %v740_v30  ;;  %v746_v44 = vld [vmem:[%s928_s1 + $0x38] sm:$0xff] (!%p138_p2)   ;;  %vm421_vm6 = vcmask (!%p138_p2), 261120   ;;  %vm426_vm7 = vcmask (!%p138_p2), 326656   ;;  %vm431_vm8 = vcmask (!%p138_p2), 392192   ;;  %vm436_vm9 = vcmask (!%p138_p2), 457728  }
   0xc   : > { %705 = vmatprep.subr.bf16.mxu0 (!%p138_p2), %v755_v0  ;;  %vm441_vm10 = vcmask (!%p138_p2), 523264   ;;  %vm446_vm11 = vcmask (!%p138_p2), 588800   ;;  %vm451_vm12 = vcmask (!%p138_p2), 654336   ;;  %vm456_vm13 = vcmask (!%p138_p2), 719872  }
   0xd   : > { %s932_s13 = smov (!%p161_p3, %s670_s13), 1  ;;  %v189_v4 = vld [vmem:[#allocation2] sm:$0xf]  ;;  %vm461_vm14 = vcmask 785408   ;;  %vm466_vm15 = vcmask 850944   ;;  %vm471_vm0 = vcmask 916480  }
   0xe   : > { %s690_s14 = sshll.u32 %s932_s13, 4  ;;  %230 = vrot.lane.b32.xlu0 %v189_v4, %s756_s18  ;;  %v193_v6 = vld [vmem:[#allocation2 + $0x1] sm:$0xf]  ;;  %vm610_vm2 = vcmask 125952  }
   0xf   : > { %s165_s17 = scalar_lea.vmem %s927_s0, %s690_s14  ;;  %v197_v12 = vld [vmem:[#allocation2 + $0x2] sm:$0xf]  ;;  %706 = vmatpush3.bf16.msra.mxu0 %v741_v31  ;;  %v217_v39 = vld [vmem:[#allocation2 + $0x28] sm:$0xf] }
  0x10   : > { %v180_v1 = vld [vmem:[%s165_s17 + $0x4] sm:$0xf]  ;;  %v179_v2 = vld [vmem:[%s165_s17] sm:$0xf]  ;;  %v181_v3 = vld [vmem:[%s165_s17 + $0x8] sm:$0xf]  ;;  %707 = vmatprep.subr.bf16.mxu0 %v755_v0 }
  0x11   : > { %186 = vst.msk [vmem:[#allocation2 + $0x11] sm:$0xf] %vm184_vm1, %v180_v1  ;;  %185 = vst.msk [vmem:[#allocation2 + $0x9] sm:$0xf] %vm184_vm1, %v179_v2  ;;  %v182_v5 = vld [vmem:[%s165_s17 + $0xc] sm:$0xf] }
  0x12   : > { %187 = vst.msk [vmem:[#allocation2 + $0x19] sm:$0xf] %vm184_vm1, %v181_v3  ;;  %188 = vst.msk [vmem:[#allocation2 + $0x21] sm:$0xf] %vm184_vm1, %v182_v5  ;;  %246 = vrot.lane.b32.xlu0 %v193_v6, %s757_s19  ;;  %v221_v45 = vld [vmem:[#allocation2 + $0x29] sm:$0xf] }
  0x13   : > { %708 = vmatpush3.bf16.msra.mxu0 %v742_v33  ;;  %v225_v48 = vld [vmem:[#allocation2 + $0x2a] sm:$0xf]  ;;  %vm476_vm1 = vcmask 982016  }
  0x14   : > { %709 = vmatprep.subr.bf16.mxu0 %v755_v0 }
  0x17   : > { %710 = vmatpush3.bf16.msra.mxu0 %v743_v35 }
  0x18   : > { %v191_v7 = vld [vmem:[#allocation2 + $0x10] sm:$0xf]  ;;  %v190_v8 = vld [vmem:[#allocation2 + $0x8] sm:$0xf]  ;;  %711 = vmatprep.subr.bf16.mxu0 %v755_v0 }
  0x19   : > { %234 = vrot.lane.b32.xlu1 %v191_v7, %s756_s18  ;;  %232 = vrot.lane.b32.xlu0 %v190_v8, %s756_s18  ;;  %v192_v9 = vld [vmem:[#allocation2 + $0x18] sm:$0xf]  ;;  %v195_v10 = vld [vmem:[#allocation2 + $0x11] sm:$0xf]  ;;  %v194_v11 = vld [vmem:[#allocation2 + $0x9] sm:$0xf] }
  0x1a   : > { %v196_v13 = vld [vmem:[#allocation2 + $0x19] sm:$0xf]  ;;  %v199_v14 = vld [vmem:[#allocation2 + $0x12] sm:$0xf]  ;;  %v198_v15 = vld [vmem:[#allocation2 + $0xa] sm:$0xf] }
  0x1b   : > { %v201_v16 = vld [vmem:[#allocation2 + $0x8] sm:$0xf]  ;;  %v200_v17 = vld [vmem:[#allocation2 + $0x1a] sm:$0xf]  ;;  %v202_v19 = vld [vmem:[#allocation2 + $0x10] sm:$0xf]  ;;  %712 = vmatpush3.bf16.msra.mxu0 %v744_v38 }
  0x1c   : > { %v203_v18 = vld [vmem:[#allocation2 + $0x18] sm:$0xf]  ;;  %v205_v20 = vld [vmem:[#allocation2 + $0x9] sm:$0xf]  ;;  %v204_v21 = vld [vmem:[#allocation2 + $0x20] sm:$0xf]  ;;  %713 = vmatprep.subr.bf16.mxu0 %v755_v0 }
  0x1d   : > { %236 = vrot.lane.b32.xlu1 %v192_v9, %s756_s18  ;;  %250 = vrot.lane.b32.xlu0 %v195_v10, %s757_s19  ;;  %v207_v22 = vld [vmem:[#allocation2 + $0x19] sm:$0xf]  ;;  %v206_v23 = vld [vmem:[#allocation2 + $0x11] sm:$0xf]  ;;  %v209_v24 = vld [vmem:[#allocation2 + $0xa] sm:$0xf] }
  0x1e   : > { %v208_v25 = vld [vmem:[#allocation2 + $0x21] sm:$0xf]  ;;  %v211_v26 = vld [vmem:[#allocation2 + $0x1a] sm:$0xf]  ;;  %v210_v27 = vld [vmem:[#allocation2 + $0x12] sm:$0xf] }
  0x1f   : > { %v212_v28 = vld [vmem:[#allocation2 + $0x22] sm:$0xf]  ;;  %v214_v32 = vld [vmem:[#allocation2 + $0x10] sm:$0xf]  ;;  %v215_v36 = vld [vmem:[#allocation2 + $0x18] sm:$0xf]  ;;  %714 = vmatpush3.bf16.msra.mxu0 %v745_v41 }
  0x20   : > { %v216_v34 = vld [vmem:[#allocation2 + $0x20] sm:$0xf]  ;;  %v218_v37 = vld [vmem:[#allocation2 + $0x11] sm:$0xf]  ;;  %v219_v42 = vld [vmem:[#allocation2 + $0x19] sm:$0xf]  ;;  %715 = vmatprep.subr.bf16.mxu0 %v755_v0 }
  0x21   : > { %248 = vrot.lane.b32.xlu1 %v194_v11, %s757_s19  ;;  %262 = vrot.lane.b32.xlu0 %v197_v12, %s758_s20  ;;  %v220_v40 = vld [vmem:[#allocation2 + $0x21] sm:$0xf]  ;;  %v222_v43 = vld [vmem:[#allocation2 + $0x12] sm:$0xf]  ;;  %v223_v47 = vld [vmem:[#allocation2 + $0x1a] sm:$0xf] }
  0x22   : > { %v224_v46 = vld [vmem:[#allocation2 + $0x22] sm:$0xf] }
  0x23   : > { %716 = vmatpush3.bf16.msra.mxu0 %v746_v44 }
  0x25   : > { %252 = vrot.lane.b32.xlu1 %v196_v13, %s757_s19  ;;  %266 = vrot.lane.b32.xlu0 %v199_v14, %s758_s20 }
  0x29   : > { %264 = vrot.lane.b32.xlu1 %v198_v15, %s758_s20  ;;  %278 = vrot.lane.b32.xlu0 %v201_v16, %s759_s21 }
  0x2d   : > { %268 = vrot.lane.b32.xlu1 %v200_v17, %s758_s20  ;;  %282 = vrot.lane.b32.xlu0 %v203_v18, %s759_s21 }
  0x31   : > { %280 = vrot.lane.b32.xlu1 %v202_v19, %s759_s21  ;;  %294 = vrot.lane.b32.xlu0 %v205_v20, %s760_s22 }
  0x35   : > { %284 = vrot.lane.b32.xlu1 %v204_v21, %s759_s21  ;;  %298 = vrot.lane.b32.xlu0 %v207_v22, %s760_s22 }
  0x39   : > { %296 = vrot.lane.b32.xlu1 %v206_v23, %s760_s22  ;;  %310 = vrot.lane.b32.xlu0 %v209_v24, %s761_s23 }
  0x3d   : > { %300 = vrot.lane.b32.xlu1 %v208_v25, %s760_s22  ;;  %314 = vrot.lane.b32.xlu0 %v211_v26, %s761_s23 }
  0x41   : > { %312 = vrot.lane.b32.xlu1 %v210_v27, %s761_s23  ;;  %322 = vrot.lane.b32.xlu0 %v201_v16, %s760_s22 }
  0x45   : > { %316 = vrot.lane.b32.xlu1 %v212_v28, %s761_s23  ;;  %326 = vrot.lane.b32.xlu0 %v203_v18, %s760_s22 }
  0x49   : > { %324 = vrot.lane.b32.xlu1 %v202_v19, %s760_s22  ;;  %334 = vrot.lane.b32.xlu0 %v205_v20, %s761_s23 }
  0x4d   : > { %328 = vrot.lane.b32.xlu1 %v204_v21, %s760_s22  ;;  %338 = vrot.lane.b32.xlu0 %v207_v22, %s761_s23  ;;  %s170_s22 = scalar_lea.vmem %s930_s3, %s690_s14 }
  0x51   : > { %336 = vrot.lane.b32.xlu1 %v206_v23, %s761_s23  ;;  %346 = vrot.lane.b32.xlu0 %v209_v24, %s762_s28 }
  0x55   : > { %340 = vrot.lane.b32.xlu1 %v208_v25, %s761_s23  ;;  %350 = vrot.lane.b32.xlu0 %v211_v26, %s762_s28 }
  0x59   : > { %348 = vrot.lane.b32.xlu1 %v210_v27, %s762_s28  ;;  %362 = vrot.lane.b32.xlu0 %v214_v32, %s763_s6 }
  0x5d   : > { %352 = vrot.lane.b32.xlu1 %v212_v28, %s762_s28  ;;  %366 = vrot.lane.b32.xlu0 %v216_v34, %s763_s6 }
  0x61   : > { %364 = vrot.lane.b32.xlu1 %v215_v36, %s763_s6  ;;  %378 = vrot.lane.b32.xlu0 %v218_v37, %s756_s18 }
  0x65   : > { %368 = vrot.lane.b32.xlu1 %v217_v39, %s763_s6  ;;  %382 = vrot.lane.b32.xlu0 %v220_v40, %s756_s18 }
  0x69   : > { %380 = vrot.lane.b32.xlu1 %v219_v42, %s756_s18  ;;  %394 = vrot.lane.b32.xlu0 %v222_v43, %s757_s19 }
  0x6d   : > { %384 = vrot.lane.b32.xlu1 %v221_v45, %s756_s18  ;;  %398 = vrot.lane.b32.xlu0 %v224_v46, %s757_s19 }
  0x71   : > { %396 = vrot.lane.b32.xlu1 %v223_v47, %s757_s19 }
  0x75   : > { %400 = vrot.lane.b32.xlu1 %v225_v48, %s757_s19 }
  0x80   : > { %v231_v49 = vpop.permute.xlu0 %230 }
  0x84   : > { %v247_v50 = vpop.permute.xlu0 %246 }
  0x85   : > { %v407_v51 = vsel %vm406_vm3, %v231_v49, %v247_v50 }
  0x86   : > { %v412_v52 = vsel %vm411_vm4, %v407_v51, %v247_v50 }
  0x8b   : > { %v235_v53 = vpop.permute.xlu1 %234  ;;  %v233_v54 = vpop.permute.xlu0 %232 }
  0x8f   : > { %v237_v55 = vpop.permute.xlu1 %236  ;;  %v251_v56 = vpop.permute.xlu0 %250 }
  0x90   : > { %v409_v57 = vsel %vm406_vm3, %v235_v53, %v251_v56 }
  0x91   : > { %v414_v58 = vsel %vm411_vm4, %v409_v57, %v251_v56 }
  0x93   : > { %v249_v59 = vpop.permute.xlu1 %248  ;;  %v263_v61 = vpop.permute.xlu0 %262 }
  0x94   : > { %v408_v60 = vsel %vm406_vm3, %v233_v54, %v249_v59  ;;  %v417_v63 = vsel %vm416_vm5, %v412_v52, %v263_v61 }
  0x95   : > { %v413_v62 = vsel %vm411_vm4, %v408_v60, %v249_v59 }
  0x97   : > { %v253_v0 = vpop.permute.xlu1 %252  ;;  %v267_v2 = vpop.permute.xlu0 %266 }
  0x98   : > { %v410_v1 = vsel %vm406_vm3, %v237_v55, %v253_v0  ;;  %v419_v39 = vsel %vm416_vm5, %v414_v58, %v267_v2 }
  0x99   : > { %v415_v3 = vsel %vm411_vm4, %v410_v1, %v253_v0 }
  0x9b   : > { %v265_v4 = vpop.permute.xlu1 %264  ;;  %v279_v6 = vpop.permute.xlu0 %278 }
  0x9c   : > { %v418_v5 = vsel %vm416_vm5, %v413_v62, %v265_v4  ;;  %v422_v33 = vsel %vm421_vm6, %v417_v63, %v279_v6 }
  0x9f   : > { %v269_v7 = vpop.permute.xlu1 %268  ;;  %v283_v8 = vpop.permute.xlu0 %282 }
  0xa0   : > { %v420_v40 = vsel %vm416_vm5, %v415_v3, %v269_v7  ;;  %v424_v41 = vsel %vm421_vm6, %v419_v39, %v283_v8 }
  0xa3   : > { %v281_v9 = vpop.permute.xlu1 %280  ;;  %v295_v10 = vpop.permute.xlu0 %294 }
  0xa4   : > { %v423_v34 = vsel %vm421_vm6, %v418_v5, %v281_v9  ;;  %v427_v36 = vsel %vm426_vm7, %v422_v33, %v295_v10 }
  0xa5   : > { %v432_v42 = vsel %vm431_vm8, %v427_v36, %v295_v10 }
  0xa7   : > { %v285_v11 = vpop.permute.xlu1 %284  ;;  %v299_v12 = vpop.permute.xlu0 %298 }
  0xa8   : > { %v425_v43 = vsel %vm421_vm6, %v420_v40, %v285_v11  ;;  %v429_v46 = vsel %vm426_vm7, %v424_v41, %v299_v12 }
  0xa9   : > { %v434_v55 = vsel %vm431_vm8, %v429_v46, %v299_v12 }
  0xab   : > { %v297_v13 = vpop.permute.xlu1 %296  ;;  %v311_v14 = vpop.permute.xlu0 %310 }
  0xac   : > { %v428_v37 = vsel %vm426_vm7, %v423_v34, %v297_v13  ;;  %v437_v47 = vsel %vm436_vm9, %v432_v42, %v311_v14 }
  0xad   : > { %v433_v44 = vsel %vm431_vm8, %v428_v37, %v297_v13 }
  0xaf   : > { %v301_v15 = vpop.permute.xlu1 %300  ;;  %v315_v16 = vpop.permute.xlu0 %314 }
  0xb0   : > { %v430_v48 = vsel %vm426_vm7, %v425_v43, %v301_v15  ;;  %v439_v58 = vsel %vm436_vm9, %v434_v55, %v315_v16 }
  0xb1   : > { %v435_v56 = vsel %vm431_vm8, %v430_v48, %v301_v15 }
  0xb3   : > { %v313_v17 = vpop.permute.xlu1 %312  ;;  %v323_v18 = vpop.permute.xlu0 %322 }
  0xb4   : > { %v438_v49 = vsel %vm436_vm9, %v433_v44, %v313_v17  ;;  %v442_v50 = vsel %vm441_vm10, %v437_v47, %v323_v18 }
  0xb7   : > { %v317_v19 = vpop.permute.xlu1 %316  ;;  %v327_v20 = vpop.permute.xlu0 %326 }
  0xb8   : > { %v440_v59 = vsel %vm436_vm9, %v435_v56, %v317_v19  ;;  %v444_v60 = vsel %vm441_vm10, %v439_v58, %v327_v20 }
  0xbb   : > { %v325_v21 = vpop.permute.xlu1 %324  ;;  %v335_v22 = vpop.permute.xlu0 %334 }
  0xbc   : > { %v443_v51 = vsel %vm441_vm10, %v438_v49, %v325_v21  ;;  %v447_v53 = vsel %vm446_vm11, %v442_v50, %v335_v22 }
  0xbd   : > { %v452_v61 = vsel %vm451_vm12, %v447_v53, %v335_v22 }
  0xbf   : > { %v329_v23 = vpop.permute.xlu1 %328  ;;  %v339_v24 = vpop.permute.xlu0 %338 }
  0xc0   : > { %v445_v62 = vsel %vm441_vm10, %v440_v59, %v329_v23  ;;  %v449_v0 = vsel %vm446_vm11, %v444_v60, %v339_v24 }
  0xc1   : > { %v454_v10 = vsel %vm451_vm12, %v449_v0, %v339_v24 }
  0xc3   : > { %v337_v25 = vpop.permute.xlu1 %336  ;;  %v347_v26 = vpop.permute.xlu0 %346 }
  0xc4   : > { %v448_v54 = vsel %vm446_vm11, %v443_v51, %v337_v25  ;;  %v457_v1 = vsel %vm456_vm13, %v452_v61, %v347_v26 }
  0xc5   : > { %v453_v63 = vsel %vm451_vm12, %v448_v54, %v337_v25 }
  0xc7   : > { %v341_v27 = vpop.permute.xlu1 %340  ;;  %v351_v28 = vpop.permute.xlu0 %350 }
  0xc8   : > { %v450_v2 = vsel %vm446_vm11, %v445_v62, %v341_v27  ;;  %v459_v12 = vsel %vm456_vm13, %v454_v10, %v351_v28 }
  0xc9   : > { %v455_v11 = vsel %vm451_vm12, %v450_v2, %v341_v27 }
  0xcb   : > { %v349_v29 = vpop.permute.xlu1 %348  ;;  %v363_v30 = vpop.permute.xlu0 %362 }
  0xcc   : > { %v458_v3 = vsel %vm456_vm13, %v453_v63, %v349_v29  ;;  %v462_v4 = vsel %vm461_vm14, %v457_v1, %v363_v30 }
  0xcf   : > { %v353_v31 = vpop.permute.xlu1 %352  ;;  %v367_v32 = vpop.permute.xlu0 %366 }
  0xd0   : > { %v460_v13 = vsel %vm456_vm13, %v455_v11, %v353_v31  ;;  %v464_v14 = vsel %vm461_vm14, %v459_v12, %v367_v32  ;;  %v679_v32 = vld [vmem:[%s929_s2] ss:$0 sm:$0xff] }
  0xd3   : > { %v365_v35 = vpop.permute.xlu1 %364  ;;  %v379_v38 = vpop.permute.xlu0 %378 }
  0xd4   : > { %v463_v5 = vsel %vm461_vm14, %v458_v3, %v365_v35  ;;  %v467_v8 = vsel %vm466_vm15, %v462_v4, %v379_v38 }
  0xd5   : > { %v472_v15 = vsel %vm471_vm0, %v467_v8, %v379_v38 }
  0xd7   : > { %v369_v45 = vpop.permute.xlu1 %368  ;;  %v383_v52 = vpop.permute.xlu0 %382 }
  0xd8   : > { %v465_v16 = vsel %vm461_vm14, %v460_v13, %v369_v45  ;;  %v469_v19 = vsel %vm466_vm15, %v464_v14, %v383_v52 }
  0xd9   : > { %v474_v25 = vsel %vm471_vm0, %v469_v19, %v383_v52 }
  0xdb   : > { %v381_v57 = vpop.permute.xlu1 %380  ;;  %v395_v6 = vpop.permute.xlu0 %394 }
  0xdc   : > { %v468_v9 = vsel %vm466_vm15, %v463_v5, %v381_v57  ;;  %v477_v20 = vsel %vm476_vm1, %v472_v15, %v395_v6 }
  0xdd   : > { %v473_v17 = vsel %vm471_vm0, %v468_v9, %v381_v57 }
  0xdf   : > { %v385_v7 = vpop.permute.xlu1 %384  ;;  %v399_v23 = vpop.permute.xlu0 %398 }
  0xe0   : > { %v470_v21 = vsel %vm466_vm15, %v465_v16, %v385_v7  ;;  %v479_v28 = vsel %vm476_vm1, %v474_v25, %v399_v23 }
  0xe1   : > { %v475_v26 = vsel %vm471_vm0, %v470_v21, %v385_v7 }
  0xe3   : > { %v397_v18 = vpop.permute.xlu1 %396 }
  0xe4   : > { %v478_v22 = vsel %vm476_vm1, %v473_v17, %v397_v18 }
  0xe5   : > { %v485_v24 = vcombine.low %v477_v20, %v478_v22 }
  0xe7   : > { %v401_v27 = vpop.permute.xlu1 %400 }
  0xe8   : > { %v480_v29 = vsel %vm476_vm1, %v475_v26, %v401_v27 }
  0xe9   : > { %v486_v30 = vcombine.low %v479_v28, %v480_v29 }
  0xeb   : > { %v489_v31 = vpack.c.bf16 %v486_v30, %v485_v24 }
  0xed   : > { %718 = vmatmul.mubr.bf16.vlgmr.msra.gmra.mrb[0].mxu0 %v489_v31 }
 0x1c0   : > { %v595_v33 = vpop.f32.mrb[0].mxu0 }
 0x1c1   : > { %v596_v34 = vadd.f32 %v679_v32, %v595_v33  ;;  %v719_v35 = vpop.f32.mrb[1].mxu0 }
 0x1c2   : > { %v598_v36 = vpop.f32.mrb[2].mxu0 }
 0x1c3   : > { %v602_v37 = vmax.f32 %v596_v34, 0.0  ;;  %v599_v38 = vadd.f32 %v679_v32, %v598_v36  ;;  %v720_v39 = vpop.f32.mrb[3].mxu0 }
 0x1c5   : > { %v606_v40 = vcombine.high %v602_v37, %v602_v37  ;;  %611 = vst.msk [vmem:[%s170_s22] sm:$0xf] %vm610_vm2, %v602_v37  ;;  %v603_v41 = vmax.f32 %v599_v38, 0.0 }
 0x1c7   : > { %612 = vst.msk [vmem:[%s170_s22 + $0x4] sm:$0xf] %vm610_vm2, %v606_v40  ;;  %v607_v42 = vcombine.high %v603_v41, %v603_v41  ;;  %613 = vst.msk [vmem:[%s170_s22 + $0x8] sm:$0xf] %vm610_vm2, %v603_v41 }
 0x1c9   : > { %614 = vst.msk [vmem:[%s170_s22 + $0xc] sm:$0xf] %vm610_vm2, %v607_v42 }
 0x1ca PF: > { %s13_s12 = sadd.s32 1, %s753_s12  }
 0x1cb   : > { %p10_p4 = scmp.ge.s32.totalorder %s13_s12, 4  }
 0x1cd   :  { %12 = sbr.rel (!%p10_p4) target bundleno = 1 (0x1), region = 64 }

// kernel: conv_encoder_forward.4
= control target key start
LH: loop header
LB: loop body
LE: loop exit
PB: predicated region body
PF: predicated region fallthrough
CT: control target
= control target key end

     0   :  { %s1312_s12 = smov 0   ;;  %s1634_s0 = inlined_call_operand.vmem [shape: f32[2,8,8,12], index: 0, kind: input, shape index: {}]   ;;  %s1635_s1 = inlined_call_operand.vmem [shape: bf16[48,8], index: 1, kind: input, shape index: {}]   ;;  %s1636_s2 = inlined_call_operand.vmem [shape: f32[1,8], index: 2, kind: input, shape index: {}]   ;;  %s1637_s3 = inlined_call_operand.vmem [shape: f32[2,8,8,8], index: 3, kind: output, shape index: {}]  }
   0x1 LB: > { %s963_s13 = sadd.s32 4294967295, %s1279_s12   ;;  %p967_p0 = scmp.ge.s32.totalorder %s1279_s12, 1  ;;  %s1279_s12 = sphi %s1312_s12, %s13_s12  }
   0x2   : > { %p137_p1 = scmp.lt.s32.totalorder %s1279_s12, 3 }
   0x4   : > { %p138_p2 = pnand %p967_p0, %p137_p1 }
   0x5   : > { %p1320_p3 = scmp.lt.s32.totalorder (!%p138_p2), %s963_s13, 1  ;;  %vm172_vm0 = vcmask (!%p138_p2), 97280   ;;  %vm174_vm1 = vcmask (!%p138_p2), 91136   ;;  %v1281_v0 = vmov (!%p138_p2), 0.0   ;;  %s1282_s19 = smov (!%p138_p2), 125   ;;  %v1270_v61 = vld [vmem:[%s1635_s1] sm:$0xff] (!%p138_p2)  }
   0x6   : > { %141 = sbr.rel (%p138_p2) target bundleno = 460 (0x1cc), region = 32  ;;  %173 = vst.msk [vmem:[#allocation2] sm:$0xff] (!%p138_p2), %vm172_vm0, %v1281_v0  ;;  %176 = vst.msk [vmem:[#allocation2 + $0x10] sm:$0xff] (!%p138_p2), %vm172_vm0, %v1281_v0  ;;  %s1283_s20 = smov (!%p138_p2), 119   ;;  %991 = vmatprep.subr.bf16.mxu0 (!%p138_p2), %v1270_v61  ;;  %1005 = vmatprep.subr.bf16.mxu1 (!%p138_p2), %v1270_v61  ;;  %v1271_v63 = vld [vmem:[%s1635_s1 + $0x8] sm:$0xff] (!%p138_p2)   ;;  %vm644_vm2 = vcmask (!%p138_p2), 23552  }
   0x7   : > { %175 = vst.msk [vmem:[#allocation2 + $0x8] sm:$0x3] (!%p138_p2), %vm174_vm1, %v1281_v0  ;;  %177 = vst.msk [vmem:[#allocation2 + $0x18] sm:$0x3] (!%p138_p2), %vm174_vm1, %v1281_v0  ;;  %s1284_s21 = smov (!%p138_p2), 3   ;;  %s1285_s22 = smov (!%p138_p2), 9   ;;  %992 = vmatpush3.bf16.msra.mxu0 (!%p138_p2), %v1270_v61  ;;  %1008 = vmatpush3.bf16.msra.mxu1 (!%p138_p2), %v1270_v61 }
   0x8   : > { %178 = vst.msk [vmem:[#allocation2 + $0x20] sm:$0xff] (!%p138_p2), %vm172_vm0, %v1281_v0  ;;  %180 = vst.msk [vmem:[#allocation2 + $0x30] sm:$0xff] (!%p138_p2), %vm172_vm0, %v1281_v0  ;;  %s1286_s23 = smov (!%p138_p2), 15   ;;  %s1287_s24 = smov (!%p138_p2), 21   ;;  %993 = vmatprep.subr.bf16.mxu0 (!%p138_p2), %v1271_v63  ;;  %1006 = vmatprep.subr.bf16.mxu1 (!%p138_p2), %v1271_v63  ;;  %vm653_vm3 = vcmask (!%p138_p2), 48128   ;;  %vm662_vm4 = vcmask (!%p138_p2), 72704  }
   0x9   : > { %179 = vst.msk [vmem:[#allocation2 + $0x28] sm:$0x3] (!%p138_p2), %vm174_vm1, %v1281_v0  ;;  %181 = vst.msk [vmem:[#allocation2 + $0x38] sm:$0x3] (!%p138_p2), %vm174_vm1, %v1281_v0  ;;  %s1288_s25 = smov (!%p138_p2), 27   ;;  %s1289_s28 = smov (!%p138_p2), 33  }
   0xa   : > { %182 = vst.msk [vmem:[#allocation2 + $0x40] sm:$0xff] (!%p138_p2), %vm172_vm0, %v1281_v0  ;;  %184 = vst.msk [vmem:[#allocation2 + $0x50] sm:$0xff] (!%p138_p2), %vm172_vm0, %v1281_v0  ;;  %s1290_s6 = smov (!%p138_p2), 39   ;;  %s1291_s7 = smov (!%p138_p2), 45   ;;  %vm679_vm5 = vcmask (!%p138_p2), 121856   ;;  %vm688_vm6 = vcmask (!%p138_p2), 146432  }
   0xb   : > { %183 = vst.msk [vmem:[#allocation2 + $0x48] sm:$0x3] (!%p138_p2), %vm174_vm1, %v1281_v0  ;;  %185 = vst.msk [vmem:[#allocation2 + $0x58] sm:$0x3] (!%p138_p2), %vm174_vm1, %v1281_v0  ;;  %994 = vmatpush3.bf16.msra.mxu0 (!%p138_p2), %v1271_v63  ;;  %1009 = vmatpush3.bf16.msra.mxu1 (!%p138_p2), %v1271_v63  ;;  %vm697_vm7 = vcmask (!%p138_p2), 171008   ;;  %vm706_vm8 = vcmask (!%p138_p2), 195584  }
   0xc   : > { %186 = vst.msk [vmem:[#allocation2 + $0x60] sm:$0xff] (!%p138_p2), %vm172_vm0, %v1281_v0  ;;  %188 = vst.msk [vmem:[#allocation2 + $0x70] sm:$0xff] (!%p138_p2), %vm172_vm0, %v1281_v0  ;;  %vm715_vm9 = vcmask (!%p138_p2), 220160   ;;  %vm724_vm10 = vcmask (!%p138_p2), 244736   ;;  %vm733_vm11 = vcmask (!%p138_p2), 269312   ;;  %vm742_vm12 = vcmask (!%p138_p2), 293888  }
   0xd   : > { %187 = vst.msk [vmem:[#allocation2 + $0x68] sm:$0x3] %vm174_vm1, %v1281_v0  ;;  %189 = vst.msk [vmem:[#allocation2 + $0x78] sm:$0x3] %vm174_vm1, %v1281_v0  ;;  %s1640_s13 = smov (!%p1320_p3, %s963_s13), 1  ;;  %v211_v10 = vld [vmem:[#allocation2] sm:$0xff] }
   0xe   : > { %190 = vst.msk [vmem:[#allocation2 + $0x80] sm:$0xff] %vm172_vm0, %v1281_v0  ;;  %192 = vst.msk [vmem:[#allocation2 + $0x90] sm:$0xff] %vm172_vm0, %v1281_v0  ;;  %s982_s15 = sshll.u32 %s1640_s13, 6  ;;  %v219_v9 = vld [vmem:[#allocation2 + $0x1] sm:$0xff]  ;;  %vm751_vm13 = vcmask 318464   ;;  %vm760_vm14 = vcmask 343040  }
   0xf   : > { %191 = vst.msk [vmem:[#allocation2 + $0x88] sm:$0x3] %vm174_vm1, %v1281_v0  ;;  %193 = vst.msk [vmem:[#allocation2 + $0x98] sm:$0x3] %vm174_vm1, %v1281_v0  ;;  %s165_s18 = scalar_lea.vmem %s1634_s0, %s982_s15  ;;  %v227_v33 = vld [vmem:[#allocation2 + $0x2] sm:$0xff]  ;;  %vm769_vm15 = vcmask 367616   ;;  %s170_s14 = scalar_lea.vmem %s1637_s3, %s982_s15 }
  0x10   : > { %v194_v1 = vld [vmem:[%s165_s18] sm:$0xff]  ;;  %v197_v2 = vld [vmem:[%s165_s18 + $0x18] sm:$0xff]  ;;  %v199_v4 = vld [vmem:[%s165_s18 + $0x28] sm:$0xff]  ;;  %vm899_vm1 = vcmask 64512  }
  0x11   : > { %v198_v3 = vld [vmem:[%s165_s18 + $0x20] sm:$0xff]  ;;  %203 = vst.msk [vmem:[#allocation2 + $0x11] sm:$0xff] %vm172_vm0, %v194_v1  ;;  %206 = vst.msk [vmem:[#allocation2 + $0x41] sm:$0xff] %vm172_vm0, %v197_v2  ;;  %v200_v5 = vld [vmem:[%s165_s18 + $0x30] sm:$0xff] }
  0x12   : > { %207 = vst.msk [vmem:[#allocation2 + $0x51] sm:$0xff] %vm172_vm0, %v198_v3  ;;  %v195_v6 = vld [vmem:[%s165_s18 + $0x8] sm:$0xff]  ;;  %208 = vst.msk [vmem:[#allocation2 + $0x61] sm:$0xff] %vm172_vm0, %v199_v4  ;;  %v196_v7 = vld [vmem:[%s165_s18 + $0x10] sm:$0xff] }
  0x13   : > { %209 = vst.msk [vmem:[#allocation2 + $0x71] sm:$0xff] %vm172_vm0, %v200_v5  ;;  %204 = vst.msk [vmem:[#allocation2 + $0x21] sm:$0xff] %vm172_vm0, %v195_v6  ;;  %v201_v8 = vld [vmem:[%s165_s18 + $0x38] sm:$0xff]  ;;  %v1272_v1 = vld [vmem:[%s1635_s1 + $0x10] sm:$0xff]  }
  0x14   : > { %205 = vst.msk [vmem:[#allocation2 + $0x31] sm:$0xff] %vm172_vm0, %v196_v7  ;;  %210 = vst.msk [vmem:[#allocation2 + $0x81] sm:$0xff] %vm172_vm0, %v201_v8  ;;  %995 = vmatprep.subr.bf16.mxu0 %v1272_v1  ;;  %1007 = vmatprep.subr.bf16.mxu1 %v1272_v1 }
  0x15   : > { %v267_v60 = vld [vmem:[#allocation2 + $0x90] sm:$0xff]  ;;  %996 = vmatpush3.bf16.msra.mxu0 %v1272_v1  ;;  %1010 = vmatpush3.bf16.msra.mxu1 %v1272_v1 }
  0x16   : > { %v275_v0 = vld [vmem:[#allocation2 + $0x91] sm:$0xff] }
  0x17   : > { %v283_v3 = vld [vmem:[#allocation2 + $0x92] sm:$0xff] }
  0x18   : > { %v220_v11 = vld [vmem:[#allocation2 + $0x11] sm:$0xff]  ;;  %v1362_v13 = vld [vmem:[#allocation2 + $0x41] sm:$0xff] }
  0x19   : > { %v212_v12 = vld [vmem:[#allocation2 + $0x10] sm:$0xff]  ;;  %v1040_v14 = vpack.i.bf16 %v220_v11, %v219_v9  ;;  %v215_v17 = vld [vmem:[#allocation2 + $0x40] sm:$0xff] }
  0x1a   : > { %v1030_v15 = vpack.i.bf16 %v212_v12, %v211_v10  ;;  %v224_v16 = vld [vmem:[#allocation2 + $0x51] sm:$0xff]  ;;  %v217_v21 = vld [vmem:[#allocation2 + $0x60] sm:$0xff] }
  0x1b   : > { %v216_v18 = vld [vmem:[#allocation2 + $0x50] sm:$0xff]  ;;  %1041 = vrot.lane.b32.xlu1 %v1040_v14, %s1282_s19  ;;  %v1365_v19 = vpack.i.bf16 %v224_v16, %v1362_v13  ;;  %v213_v23 = vld [vmem:[#allocation2 + $0x20] sm:$0xff] }
  0x1c   : > { %1031 = vrot.lane.b32.xlu0 %v1030_v15, %s1283_s20  ;;  %v1367_v20 = vpack.i.bf16 %v216_v18, %v215_v17  ;;  %v218_v22 = vld [vmem:[#allocation2 + $0x70] sm:$0xff]  ;;  %v225_v27 = vld [vmem:[#allocation2 + $0x61] sm:$0xff]  ;;  %v1095_v45 = vpack.i.bf16 %v217_v21, %v216_v18  ;;  %v1090_v46 = vpack.i.bf16 %v213_v23, %v212_v12 }
  0x1d   : > { %v214_v24 = vld [vmem:[#allocation2 + $0x30] sm:$0xff]  ;;  %v1371_v25 = vpack.i.bf16 %v218_v22, %v217_v21  ;;  %v221_v29 = vld [vmem:[#allocation2 + $0x21] sm:$0xff]  ;;  %v1115_v50 = vpack.i.bf16 %v225_v27, %v224_v16 }
  0x1e   : > { %v1373_v26 = vpack.i.bf16 %v214_v24, %v213_v23  ;;  %v226_v28 = vld [vmem:[#allocation2 + $0x71] sm:$0xff]  ;;  %v231_v34 = vld [vmem:[#allocation2 + $0x42] sm:$0xff]  ;;  %v1100_v49 = vpack.i.bf16 %v215_v17, %v214_v24  ;;  %v1110_v51 = vpack.i.bf16 %v221_v29, %v220_v11 }
  0x1f   : > { %1046 = vrot.lane.b32.xlu1 %v1365_v19, %s1282_s19  ;;  %v222_v30 = vld [vmem:[#allocation2 + $0x31] sm:$0xff]  ;;  %v1377_v31 = vpack.i.bf16 %v226_v28, %v225_v27  ;;  %v233_v39 = vld [vmem:[#allocation2 + $0x62] sm:$0xff] }
  0x20   : > { %1036 = vrot.lane.b32.xlu0 %v1367_v20, %s1283_s20  ;;  %v1379_v32 = vpack.i.bf16 %v222_v30, %v221_v29  ;;  %v232_v35 = vld [vmem:[#allocation2 + $0x52] sm:$0xff]  ;;  %v229_v41 = vld [vmem:[#allocation2 + $0x22] sm:$0xff]  ;;  %v1120_v54 = vpack.i.bf16 %v1362_v13, %v222_v30 }
  0x21   : > { %v228_v36 = vld [vmem:[#allocation2 + $0x12] sm:$0xff]  ;;  %v1383_v37 = vpack.i.bf16 %v232_v35, %v231_v34  ;;  %v242_v47 = vld [vmem:[#allocation2 + $0x80] sm:$0xff]  ;;  %v1135_v55 = vpack.i.bf16 %v233_v39, %v232_v35 }
  0x22   : > { %v1070_v38 = vpack.i.bf16 %v228_v36, %v227_v33  ;;  %v234_v40 = vld [vmem:[#allocation2 + $0x72] sm:$0xff]  ;;  %v1105_v48 = vpack.i.bf16 %v242_v47, %v218_v22  ;;  %v250_v52 = vld [vmem:[#allocation2 + $0x81] sm:$0xff]  ;;  %v1130_v56 = vpack.i.bf16 %v229_v41, %v228_v36  ;;  %v1225_v62 = vpack.i.bf16 %v267_v60, %v242_v47 }
  0x23   : > { %1056 = vrot.lane.b32.xlu1 %v1371_v25, %s1283_s20  ;;  %v230_v42 = vld [vmem:[#allocation2 + $0x32] sm:$0xff]  ;;  %v1386_v43 = vpack.i.bf16 %v234_v40, %v233_v39  ;;  %v1125_v53 = vpack.i.bf16 %v250_v52, %v226_v28  ;;  %v258_v57 = vld [vmem:[#allocation2 + $0x82] sm:$0xff]  ;;  %v1245_v2 = vpack.i.bf16 %v275_v0, %v250_v52 }
  0x24   : > { %1051 = vrot.lane.b32.xlu0 %v1373_v26, %s1283_s20  ;;  %v1388_v44 = vpack.i.bf16 %v230_v42, %v229_v41  ;;  %v1145_v58 = vpack.i.bf16 %v258_v57, %v234_v40  ;;  %v1140_v59 = vpack.i.bf16 %v231_v34, %v230_v42  ;;  %v1265_v4 = vpack.i.bf16 %v283_v3, %v258_v57 }
  0x27   : > { %1066 = vrot.lane.b32.xlu1 %v1377_v31, %s1282_s19 }
  0x28   : > { %1061 = vrot.lane.b32.xlu0 %v1379_v32, %s1282_s19 }
  0x2b   : > { %1076 = vrot.lane.b32.xlu1 %v1383_v37, %s1284_s21 }
  0x2c   : > { %1071 = vrot.lane.b32.xlu0 %v1070_v38, %s1284_s21 }
  0x2f   : > { %1086 = vrot.lane.b32.xlu1 %v1386_v43, %s1284_s21 }
  0x30   : > { %1081 = vrot.lane.b32.xlu0 %v1388_v44, %s1284_s21 }
  0x33   : > { %1096 = vrot.lane.b32.xlu1 %v1095_v45, %s1285_s22 }
  0x34   : > { %1091 = vrot.lane.b32.xlu0 %v1090_v46, %s1285_s22 }
  0x37   : > { %1106 = vrot.lane.b32.xlu1 %v1105_v48, %s1285_s22 }
  0x38   : > { %1101 = vrot.lane.b32.xlu0 %v1100_v49, %s1285_s22 }
  0x3b   : > { %1116 = vrot.lane.b32.xlu1 %v1115_v50, %s1286_s23 }
  0x3c   : > { %1111 = vrot.lane.b32.xlu0 %v1110_v51, %s1286_s23 }
  0x3f   : > { %1126 = vrot.lane.b32.xlu1 %v1125_v53, %s1286_s23 }
  0x40   : > { %1121 = vrot.lane.b32.xlu0 %v1120_v54, %s1286_s23 }
  0x43   : > { %1136 = vrot.lane.b32.xlu1 %v1135_v55, %s1287_s24 }
  0x44   : > { %1131 = vrot.lane.b32.xlu0 %v1130_v56, %s1287_s24 }
  0x47   : > { %1146 = vrot.lane.b32.xlu1 %v1145_v58, %s1287_s24 }
  0x48   : > { %1141 = vrot.lane.b32.xlu0 %v1140_v59, %s1287_s24 }
  0x4b   : > { %1156 = vrot.lane.b32.xlu1 %v1095_v45, %s1286_s23 }
  0x4c   : > { %1151 = vrot.lane.b32.xlu0 %v1090_v46, %s1286_s23 }
  0x4f   : > { %1166 = vrot.lane.b32.xlu1 %v1105_v48, %s1286_s23 }
  0x50   : > { %1161 = vrot.lane.b32.xlu0 %v1100_v49, %s1286_s23 }
  0x53   : > { %1176 = vrot.lane.b32.xlu1 %v1115_v50, %s1287_s24 }
  0x54   : > { %1171 = vrot.lane.b32.xlu0 %v1110_v51, %s1287_s24 }
  0x57   : > { %1186 = vrot.lane.b32.xlu1 %v1125_v53, %s1287_s24 }
  0x58   : > { %1181 = vrot.lane.b32.xlu0 %v1120_v54, %s1287_s24 }
  0x5b   : > { %1196 = vrot.lane.b32.xlu1 %v1135_v55, %s1288_s25 }
  0x5c   : > { %1191 = vrot.lane.b32.xlu0 %v1130_v56, %s1288_s25 }
  0x5f   : > { %1206 = vrot.lane.b32.xlu1 %v1145_v58, %s1288_s25 }
  0x60   : > { %1201 = vrot.lane.b32.xlu0 %v1140_v59, %s1288_s25 }
  0x63   : > { %1216 = vrot.lane.b32.xlu1 %v1371_v25, %s1289_s28 }
  0x64   : > { %1211 = vrot.lane.b32.xlu0 %v1373_v26, %s1289_s28 }
  0x67   : > { %1226 = vrot.lane.b32.xlu1 %v1225_v62, %s1289_s28 }
  0x68   : > { %1221 = vrot.lane.b32.xlu0 %v1367_v20, %s1289_s28 }
  0x6b   : > { %1236 = vrot.lane.b32.xlu1 %v1377_v31, %s1290_s6 }
  0x6c   : > { %1231 = vrot.lane.b32.xlu0 %v1379_v32, %s1290_s6 }
  0x6f   : > { %1246 = vrot.lane.b32.xlu1 %v1245_v2, %s1290_s6 }
  0x70   : > { %1241 = vrot.lane.b32.xlu0 %v1365_v19, %s1290_s6 }
  0x73   : > { %1256 = vrot.lane.b32.xlu1 %v1386_v43, %s1291_s7 }
  0x74   : > { %1251 = vrot.lane.b32.xlu0 %v1388_v44, %s1291_s7 }
  0x77   : > { %1266 = vrot.lane.b32.xlu1 %v1265_v4, %s1291_s7 }
  0x78   : > { %1261 = vrot.lane.b32.xlu0 %v1383_v37, %s1291_s7 }
  0x8d   : > { %v1042_v5 = vpop.permute.xlu1 %1041 }
  0x8e   : > { %v1032_v6 = vpop.permute.xlu0 %1031  ;;  %v1044_v7 = vunpack.i.h.bf16 %v1042_v5  ;;  %v1043_v8 = vunpack.i.l.bf16 %v1042_v5 }
  0x8f   : > { %v1034_v9 = vunpack.i.h.bf16 %v1032_v6  ;;  %v1033_v10 = vunpack.i.l.bf16 %v1032_v6 }
  0x91   : > { %v646_v11 = vsel %vm644_vm2, %v1034_v9, %v1044_v7  ;;  %v645_v12 = vsel %vm644_vm2, %v1033_v10, %v1043_v8  ;;  %v1047_v13 = vpop.permute.xlu1 %1046 }
  0x92   : > { %v1037_v14 = vpop.permute.xlu0 %1036  ;;  %v654_v15 = vsel %vm653_vm3, %v645_v12, %v1043_v8  ;;  %v655_v16 = vsel %vm653_vm3, %v646_v11, %v1044_v7  ;;  %v1049_v17 = vunpack.i.h.bf16 %v1047_v13  ;;  %v1048_v18 = vunpack.i.l.bf16 %v1047_v13 }
  0x93   : > { %v1039_v19 = vunpack.i.h.bf16 %v1037_v14  ;;  %v1038_v20 = vunpack.i.l.bf16 %v1037_v14 }
  0x95   : > { %v650_v21 = vsel %vm644_vm2, %v1039_v19, %v1049_v17  ;;  %v649_v22 = vsel %vm644_vm2, %v1038_v20, %v1048_v18  ;;  %v1057_v23 = vpop.permute.xlu1 %1056 }
  0x96   : > { %v1052_v24 = vpop.permute.xlu0 %1051  ;;  %v658_v25 = vsel %vm653_vm3, %v649_v22, %v1048_v18  ;;  %v659_v26 = vsel %vm653_vm3, %v650_v21, %v1049_v17  ;;  %v1059_v27 = vunpack.i.h.bf16 %v1057_v23  ;;  %v1058_v28 = vunpack.i.l.bf16 %v1057_v23 }
  0x97   : > { %v1054_v29 = vunpack.i.h.bf16 %v1052_v24  ;;  %v1053_v30 = vunpack.i.l.bf16 %v1052_v24 }
  0x99   : > { %v1067_v31 = vpop.permute.xlu1 %1066 }
  0x9a   : > { %v1062_v32 = vpop.permute.xlu0 %1061  ;;  %v1069_v33 = vunpack.i.h.bf16 %v1067_v31  ;;  %v1068_v34 = vunpack.i.l.bf16 %v1067_v31 }
  0x9b   : > { %v1064_v35 = vunpack.i.h.bf16 %v1062_v32  ;;  %v1063_v36 = vunpack.i.l.bf16 %v1062_v32 }
  0x9c   : > { %v651_v37 = vsel %vm644_vm2, %v1058_v28, %v1068_v34  ;;  %v652_v38 = vsel %vm644_vm2, %v1059_v27, %v1069_v33 }
  0x9d   : > { %v647_v39 = vsel %vm644_vm2, %v1053_v30, %v1063_v36  ;;  %v648_v40 = vsel %vm644_vm2, %v1054_v29, %v1064_v35  ;;  %v660_v41 = vsel %vm653_vm3, %v651_v37, %v1068_v34  ;;  %v661_v42 = vsel %vm653_vm3, %v652_v38, %v1069_v33  ;;  %v1077_v45 = vpop.permute.xlu1 %1076 }
  0x9e   : > { %v656_v43 = vsel %vm653_vm3, %v647_v39, %v1063_v36  ;;  %v657_v44 = vsel %vm653_vm3, %v648_v40, %v1064_v35  ;;  %v1072_v46 = vpop.permute.xlu0 %1071  ;;  %v1079_v61 = vunpack.i.h.bf16 %v1077_v45  ;;  %v1078_v62 = vunpack.i.l.bf16 %v1077_v45 }
  0x9f   : > { %v1074_v63 = vunpack.i.h.bf16 %v1072_v46  ;;  %v1073_v0 = vunpack.i.l.bf16 %v1072_v46 }
  0xa0   : > { %v667_v7 = vsel %vm662_vm4, %v658_v25, %v1078_v62  ;;  %v668_v8 = vsel %vm662_vm4, %v659_v26, %v1079_v61 }
  0xa1   : > { %v1087_v47 = vpop.permute.xlu1 %1086  ;;  %v663_v9 = vsel %vm662_vm4, %v654_v15, %v1073_v0  ;;  %v664_v10 = vsel %vm662_vm4, %v655_v16, %v1074_v63 }
  0xa2   : > { %v1082_v48 = vpop.permute.xlu0 %1081  ;;  %v1089_v1 = vunpack.i.h.bf16 %v1087_v47  ;;  %v1088_v2 = vunpack.i.l.bf16 %v1087_v47 }
  0xa3   : > { %v1084_v3 = vunpack.i.h.bf16 %v1082_v48  ;;  %v1083_v4 = vunpack.i.l.bf16 %v1082_v48 }
  0xa4   : > { %v669_v11 = vsel %vm662_vm4, %v660_v41, %v1088_v2  ;;  %v670_v12 = vsel %vm662_vm4, %v661_v42, %v1089_v1 }
  0xa5   : > { %v1097_v49 = vpop.permute.xlu1 %1096  ;;  %v665_v13 = vsel %vm662_vm4, %v656_v43, %v1083_v4  ;;  %v666_v14 = vsel %vm662_vm4, %v657_v44, %v1084_v3 }
  0xa6   : > { %v1092_v50 = vpop.permute.xlu0 %1091  ;;  %v1099_v19 = vunpack.i.h.bf16 %v1097_v49  ;;  %v1098_v20 = vunpack.i.l.bf16 %v1097_v49 }
  0xa7   : > { %v1094_v21 = vunpack.i.h.bf16 %v1092_v50  ;;  %v1093_v22 = vunpack.i.l.bf16 %v1092_v50 }
  0xa8   : > { %v675_v35 = vsel %vm172_vm0, %v667_v7, %v1098_v20  ;;  %v676_v36 = vsel %vm172_vm0, %v668_v8, %v1099_v19 }
  0xa9   : > { %v1107_v51 = vpop.permute.xlu1 %1106  ;;  %v671_v37 = vsel %vm172_vm0, %v663_v9, %v1093_v22  ;;  %v672_v38 = vsel %vm172_vm0, %v664_v10, %v1094_v21 }
  0xaa   : > { %v1102_v52 = vpop.permute.xlu0 %1101  ;;  %v1109_v15 = vunpack.i.h.bf16 %v1107_v51  ;;  %v1108_v23 = vunpack.i.l.bf16 %v1107_v51 }
  0xab   : > { %v1104_v16 = vunpack.i.h.bf16 %v1102_v52  ;;  %v1103_v24 = vunpack.i.l.bf16 %v1102_v52 }
  0xac   : > { %v677_v39 = vsel %vm172_vm0, %v669_v11, %v1108_v23  ;;  %v678_v40 = vsel %vm172_vm0, %v670_v12, %v1109_v15 }
  0xad   : > { %v1427_v53 = vpop.permute.xlu1 %1116  ;;  %v673_v41 = vsel %vm172_vm0, %v665_v13, %v1103_v24  ;;  %v674_v42 = vsel %vm172_vm0, %v666_v14, %v1104_v16  ;;  %vm813_vm0 = vcmask 392192  }
  0xae   : > { %v1429_v54 = vpop.permute.xlu0 %1111  ;;  %v1119_v25 = vunpack.i.h.bf16 %v1427_v53  ;;  %v1118_v26 = vunpack.i.l.bf16 %v1427_v53 }
  0xaf   : > { %v1114_v27 = vunpack.i.h.bf16 %v1429_v54  ;;  %v1113_v28 = vunpack.i.l.bf16 %v1429_v54 }
  0xb0   : > { %v684_v43 = vsel %vm679_vm5, %v675_v35, %v1118_v26  ;;  %v685_v44 = vsel %vm679_vm5, %v676_v36, %v1119_v25 }
  0xb1   : > { %v1431_v55 = vpop.permute.xlu1 %1126  ;;  %v680_v45 = vsel %vm679_vm5, %v671_v37, %v1113_v28  ;;  %v681_v46 = vsel %vm679_vm5, %v672_v38, %v1114_v27  ;;  %v693_v1 = vsel %vm688_vm6, %v684_v43, %v1118_v26  ;;  %v694_v2 = vsel %vm688_vm6, %v685_v44, %v1119_v25 }
  0xb2   : > { %v1433_v56 = vpop.permute.xlu0 %1121  ;;  %v1129_v29 = vunpack.i.h.bf16 %v1431_v55  ;;  %v1128_v30 = vunpack.i.l.bf16 %v1431_v55  ;;  %v689_v3 = vsel %vm688_vm6, %v680_v45, %v1113_v28 }
  0xb3   : > { %v1124_v31 = vunpack.i.h.bf16 %v1433_v56  ;;  %v1123_v32 = vunpack.i.l.bf16 %v1433_v56 }
  0xb4   : > { %v686_v47 = vsel %vm679_vm5, %v677_v39, %v1128_v30  ;;  %v687_v48 = vsel %vm679_vm5, %v678_v40, %v1129_v29 }
  0xb5   : > { %v1435_v57 = vpop.permute.xlu1 %1136  ;;  %v682_v49 = vsel %vm679_vm5, %v673_v41, %v1123_v32  ;;  %v683_v50 = vsel %vm679_vm5, %v674_v42, %v1124_v31  ;;  %v695_v4 = vsel %vm688_vm6, %v686_v47, %v1128_v30 }
  0xb6   : > { %v1437_v58 = vpop.permute.xlu0 %1131  ;;  %v1139_v53 = vunpack.i.h.bf16 %v1435_v57  ;;  %v1138_v54 = vunpack.i.l.bf16 %v1435_v57  ;;  %v690_v57 = vsel %vm688_vm6, %v681_v46, %v1114_v27  ;;  %v691_v7 = vsel %vm688_vm6, %v682_v49, %v1123_v32 }
  0xb7   : > { %v1134_v55 = vunpack.i.h.bf16 %v1437_v58  ;;  %v1133_v56 = vunpack.i.l.bf16 %v1437_v58  ;;  %v696_v58 = vsel %vm688_vm6, %v687_v48, %v1129_v29 }
  0xb8   : > { %v702_v9 = vsel %vm697_vm7, %v693_v1, %v1138_v54  ;;  %v703_v10 = vsel %vm697_vm7, %v694_v2, %v1139_v53 }
  0xb9   : > { %v1439_v59 = vpop.permute.xlu1 %1146  ;;  %v698_v11 = vsel %vm697_vm7, %v689_v3, %v1133_v56  ;;  %v699_v12 = vsel %vm697_vm7, %v690_v57, %v1134_v55 }
  0xba   : > { %v1441_v60 = vpop.permute.xlu0 %1141  ;;  %v1149_v61 = vunpack.i.h.bf16 %v1439_v59  ;;  %v1148_v62 = vunpack.i.l.bf16 %v1439_v59  ;;  %v692_v59 = vsel %vm688_vm6, %v683_v50, %v1124_v31 }
  0xbb   : > { %v1144_v63 = vunpack.i.h.bf16 %v1441_v60  ;;  %v1143_v0 = vunpack.i.l.bf16 %v1441_v60 }
  0xbc   : > { %v704_v13 = vsel %vm697_vm7, %v695_v4, %v1148_v62  ;;  %v705_v14 = vsel %vm697_vm7, %v696_v58, %v1149_v61 }
  0xbd   : > { %v1443_v5 = vpop.permute.xlu1 %1156  ;;  %v700_v19 = vsel %vm697_vm7, %v691_v7, %v1143_v0  ;;  %v701_v20 = vsel %vm697_vm7, %v692_v59, %v1144_v63 }
  0xbe   : > { %v1445_v6 = vpop.permute.xlu0 %1151  ;;  %v1159_v21 = vunpack.i.h.bf16 %v1443_v5  ;;  %v1158_v22 = vunpack.i.l.bf16 %v1443_v5 }
  0xbf   : > { %v1154_v15 = vunpack.i.h.bf16 %v1445_v6  ;;  %v1153_v23 = vunpack.i.l.bf16 %v1445_v6 }
  0xc0   : > { %v711_v35 = vsel %vm706_vm8, %v702_v9, %v1158_v22  ;;  %v712_v36 = vsel %vm706_vm8, %v703_v10, %v1159_v21 }
  0xc1   : > { %v1455_v17 = vpop.permute.xlu1 %1166  ;;  %v707_v37 = vsel %vm706_vm8, %v698_v11, %v1153_v23 }
  0xc2   : > { %v1457_v18 = vpop.permute.xlu0 %1161  ;;  %v1169_v16 = vunpack.i.h.bf16 %v1455_v17  ;;  %v1168_v24 = vunpack.i.l.bf16 %v1455_v17 }
  0xc3   : > { %v1164_v25 = vunpack.i.h.bf16 %v1457_v18  ;;  %v1163_v26 = vunpack.i.l.bf16 %v1457_v18 }
  0xc4   : > { %v713_v38 = vsel %vm706_vm8, %v704_v13, %v1168_v24 }
  0xc5   : > { %v1467_v33 = vpop.permute.xlu1 %1176  ;;  %v709_v39 = vsel %vm706_vm8, %v700_v19, %v1163_v26  ;;  %v710_v40 = vsel %vm706_vm8, %v701_v20, %v1164_v25 }
  0xc6   : > { %v1469_v34 = vpop.permute.xlu0 %1171  ;;  %v1179_v29 = vunpack.i.h.bf16 %v1467_v33  ;;  %v1178_v5 = vunpack.i.l.bf16 %v1467_v33  ;;  %v708_v33 = vsel %vm706_vm8, %v699_v12, %v1154_v15 }
  0xc7   : > { %v1174_v30 = vunpack.i.h.bf16 %v1469_v34  ;;  %v1173_v6 = vunpack.i.l.bf16 %v1469_v34  ;;  %v714_v34 = vsel %vm706_vm8, %v705_v14, %v1169_v16 }
  0xc8   : > { %v720_v43 = vsel %vm715_vm9, %v711_v35, %v1178_v5  ;;  %v721_v44 = vsel %vm715_vm9, %v712_v36, %v1179_v29 }
  0xc9   : > { %v1487_v51 = vpop.permute.xlu1 %1186  ;;  %v716_v45 = vsel %vm715_vm9, %v707_v37, %v1173_v6  ;;  %v717_v46 = vsel %vm715_vm9, %v708_v33, %v1174_v30  ;;  %v729_v55 = vsel %vm724_vm10, %v720_v43, %v1178_v5  ;;  %v730_v56 = vsel %vm724_vm10, %v721_v44, %v1179_v29 }
  0xca   : > { %v1489_v52 = vpop.permute.xlu0 %1181  ;;  %v1189_v31 = vunpack.i.h.bf16 %v1487_v51  ;;  %v1188_v17 = vunpack.i.l.bf16 %v1487_v51  ;;  %v725_v61 = vsel %vm724_vm10, %v716_v45, %v1173_v6  ;;  %v726_v62 = vsel %vm724_vm10, %v717_v46, %v1174_v30 }
  0xcb   : > { %v1184_v32 = vunpack.i.h.bf16 %v1489_v52  ;;  %v1183_v18 = vunpack.i.l.bf16 %v1489_v52 }
  0xcc   : > { %v722_v47 = vsel %vm715_vm9, %v713_v38, %v1188_v17  ;;  %v723_v48 = vsel %vm715_vm9, %v714_v34, %v1189_v31 }
  0xcd   : > { %v1507_v8 = vpop.permute.xlu1 %1196  ;;  %v718_v49 = vsel %vm715_vm9, %v709_v39, %v1183_v18  ;;  %v719_v50 = vsel %vm715_vm9, %v710_v40, %v1184_v32  ;;  %v731_v1 = vsel %vm724_vm10, %v722_v47, %v1188_v17  ;;  %v732_v2 = vsel %vm724_vm10, %v723_v48, %v1189_v31 }
  0xce   : > { %v1509_v60 = vpop.permute.xlu0 %1191  ;;  %v1199_v51 = vunpack.i.h.bf16 %v1507_v8  ;;  %v1198_v52 = vunpack.i.l.bf16 %v1507_v8  ;;  %v727_v3 = vsel %vm724_vm10, %v718_v49, %v1183_v18  ;;  %v728_v4 = vsel %vm724_vm10, %v719_v50, %v1184_v32 }
  0xcf   : > { %v1194_v53 = vunpack.i.h.bf16 %v1509_v60  ;;  %v1193_v54 = vunpack.i.l.bf16 %v1509_v60 }
  0xd0   : > { %v738_v8 = vsel %vm733_vm11, %v729_v55, %v1198_v52  ;;  %v739_v60 = vsel %vm733_vm11, %v730_v56, %v1199_v51 }
  0xd1   : > { %v1527_v27 = vpop.permute.xlu1 %1206  ;;  %v734_v9 = vsel %vm733_vm11, %v725_v61, %v1193_v54  ;;  %v735_v10 = vsel %vm733_vm11, %v726_v62, %v1194_v53 }
  0xd2   : > { %v1529_v28 = vpop.permute.xlu0 %1201  ;;  %v1208_v57 = vunpack.i.l.bf16 %v1527_v27  ;;  %v1209_v58 = vunpack.i.h.bf16 %v1527_v27 }
  0xd3   : > { %v1204_v7 = vunpack.i.h.bf16 %v1529_v28  ;;  %v1203_v59 = vunpack.i.l.bf16 %v1529_v28 }
  0xd4   : > { %v740_v21 = vsel %vm733_vm11, %v731_v1, %v1208_v57  ;;  %v741_v16 = vsel %vm733_vm11, %v732_v2, %v1209_v58 }
  0xd5   : > { %v1217_v41 = vpop.permute.xlu1 %1216  ;;  %v736_v24 = vsel %vm733_vm11, %v727_v3, %v1203_v59  ;;  %v737_v25 = vsel %vm733_vm11, %v728_v4, %v1204_v7 }
  0xd6   : > { %v1212_v42 = vpop.permute.xlu0 %1211  ;;  %v1219_v11 = vunpack.i.h.bf16 %v1217_v41  ;;  %v1218_v12 = vunpack.i.l.bf16 %v1217_v41 }
  0xd7   : > { %v1214_v13 = vunpack.i.h.bf16 %v1212_v42  ;;  %v1213_v14 = vunpack.i.l.bf16 %v1212_v42 }
  0xd8   : > { %v747_v30 = vsel %vm742_vm12, %v738_v8, %v1218_v12  ;;  %v748_v6 = vsel %vm742_vm12, %v739_v60, %v1219_v11 }
  0xd9   : > { %v1227_v63 = vpop.permute.xlu1 %1226  ;;  %v743_v31 = vsel %vm742_vm12, %v734_v9, %v1213_v14  ;;  %v744_v17 = vsel %vm742_vm12, %v735_v10, %v1214_v13 }
  0xda   : > { %v1222_v0 = vpop.permute.xlu0 %1221  ;;  %v1228_v26 = vunpack.i.l.bf16 %v1227_v63  ;;  %v1229_v27 = vunpack.i.h.bf16 %v1227_v63 }
  0xdb   : > { %v1224_v28 = vunpack.i.h.bf16 %v1222_v0  ;;  %v1223_v29 = vunpack.i.l.bf16 %v1222_v0 }
  0xdc   : > { %v749_v38 = vsel %vm742_vm12, %v740_v21, %v1228_v26  ;;  %v750_v41 = vsel %vm742_vm12, %v741_v16, %v1229_v27 }
  0xdd   : > { %v1237_v19 = vpop.permute.xlu1 %1236  ;;  %v745_v42 = vsel %vm742_vm12, %v736_v24, %v1223_v29  ;;  %v746_v43 = vsel %vm742_vm12, %v737_v25, %v1224_v28 }
  0xde   : > { %v1232_v20 = vpop.permute.xlu0 %1231  ;;  %v1238_v22 = vunpack.i.l.bf16 %v1237_v19  ;;  %v1239_v5 = vunpack.i.h.bf16 %v1237_v19 }
  0xdf   : > { %v1234_v15 = vunpack.i.h.bf16 %v1232_v20  ;;  %v1233_v23 = vunpack.i.l.bf16 %v1232_v20 }
  0xe0   : > { %v756_v35 = vsel %vm751_vm13, %v747_v30, %v1238_v22  ;;  %v757_v44 = vsel %vm751_vm13, %v748_v6, %v1239_v5 }
  0xe1   : > { %v1247_v32 = vpop.permute.xlu1 %1246  ;;  %v752_v36 = vsel %vm751_vm13, %v743_v31, %v1233_v23  ;;  %v753_v37 = vsel %vm751_vm13, %v744_v17, %v1234_v15  ;;  %v765_v50 = vsel %vm760_vm14, %v756_v35, %v1238_v22  ;;  %v766_v62 = vsel %vm760_vm14, %v757_v44, %v1239_v5 }
  0xe2   : > { %v1242_v18 = vpop.permute.xlu0 %1241  ;;  %v1248_v33 = vunpack.i.l.bf16 %v1247_v32  ;;  %v1249_v34 = vunpack.i.h.bf16 %v1247_v32  ;;  %v761_v48 = vsel %vm760_vm14, %v752_v36, %v1233_v23  ;;  %v762_v49 = vsel %vm760_vm14, %v753_v37, %v1234_v15  ;;  %v972_v15 = vld [vmem:[%s1636_s2] ss:$0 sm:$0xff] }
  0xe3   : > { %v1244_v39 = vunpack.i.h.bf16 %v1242_v18  ;;  %v1243_v40 = vunpack.i.l.bf16 %v1242_v18 }
  0xe4   : > { %v758_v45 = vsel %vm751_vm13, %v749_v38, %v1248_v33  ;;  %v759_v55 = vsel %vm751_vm13, %v750_v41, %v1249_v34 }
  0xe5   : > { %v1257_v46 = vpop.permute.xlu1 %1256  ;;  %v754_v56 = vsel %vm751_vm13, %v745_v42, %v1243_v40  ;;  %v755_v61 = vsel %vm751_vm13, %v746_v43, %v1244_v39  ;;  %v767_v3 = vsel %vm760_vm14, %v758_v45, %v1248_v33  ;;  %v768_v10 = vsel %vm760_vm14, %v759_v55, %v1249_v34 }
  0xe6   : > { %v1252_v47 = vpop.permute.xlu0 %1251  ;;  %v1259_v51 = vunpack.i.h.bf16 %v1257_v46  ;;  %v1258_v52 = vunpack.i.l.bf16 %v1257_v46  ;;  %v763_v11 = vsel %vm760_vm14, %v754_v56, %v1243_v40  ;;  %v764_v12 = vsel %vm760_vm14, %v755_v61, %v1244_v39 }
  0xe7   : > { %v1254_v53 = vunpack.i.h.bf16 %v1252_v47  ;;  %v1253_v54 = vunpack.i.l.bf16 %v1252_v47 }
  0xe8   : > { %v774_v1 = vsel %vm769_vm15, %v765_v50, %v1258_v52  ;;  %v775_v2 = vsel %vm769_vm15, %v766_v62, %v1259_v51 }
  0xe9   : > { %v770_v63 = vsel %vm769_vm15, %v761_v48, %v1253_v54  ;;  %v771_v0 = vsel %vm769_vm15, %v762_v49, %v1254_v53  ;;  %v1267_v57 = vpop.permute.xlu1 %1266  ;;  %v780_v7 = vpack.c.bf16 %v775_v2, %v774_v1 }
  0xea   : > { %v1262_v4 = vpop.permute.xlu0 %1261  ;;  %v778_v58 = vpack.c.bf16 %v771_v0, %v770_v63  ;;  %v1269_v59 = vunpack.i.h.bf16 %v1267_v57  ;;  %v1268_v8 = vunpack.i.l.bf16 %v1267_v57 }
  0xeb   : > { %v1264_v60 = vunpack.i.h.bf16 %v1262_v4  ;;  %v1263_v9 = vunpack.i.l.bf16 %v1262_v4  ;;  %1001 = vmatprep.mubr.msk.bf16.mxu1 %vm813_vm0, %v780_v7 }
  0xec   : > { %997 = vmatprep.mubr.msk.bf16.mxu0 %vm813_vm0, %v778_v58  ;;  %v776_v13 = vsel %vm769_vm15, %v767_v3, %v1268_v8  ;;  %v777_v14 = vsel %vm769_vm15, %v768_v10, %v1269_v59 }
  0xed   : > { %v772_v19 = vsel %vm769_vm15, %v763_v11, %v1263_v9  ;;  %v773_v20 = vsel %vm769_vm15, %v764_v12, %v1264_v60  ;;  %v781_v21 = vpack.c.bf16 %v777_v14, %v776_v13 }
  0xee   : > { %v779_v22 = vpack.c.bf16 %v773_v20, %v772_v19 }
  0xef   : > { %1002 = vmatmul.mubr.msk.bf16.vlgmr.msra.gmra.mrb[0].mxu1 %vm813_vm0, %v781_v21 }
  0xf0   : > { %998 = vmatmul.mubr.msk.bf16.vlgmr.msra.gmra.mrb[0].mxu0 %vm813_vm0, %v779_v22 }
 0x1c2   : > { %v1003_v16 = vpop.f32.mrb[0].mxu1 }
 0x1c3   : > { %v999_v23 = vpop.f32.mrb[0].mxu0  ;;  %v885_v25 = vadd.f32 %v1003_v16, %v972_v15  ;;  %v876_v27 = vpop.f32.mrb[1].mxu1 }
 0x1c4   : > { %v869_v24 = vadd.f32 %v999_v23, %v972_v15  ;;  %v860_v26 = vpop.f32.mrb[1].mxu0  ;;  %v877_v29 = vadd.f32 %v972_v15, %v876_v27  ;;  %v1004_v30 = vpop.f32.mrb[2].mxu1 }
 0x1c5   : > { %v861_v28 = vadd.f32 %v972_v15, %v860_v26  ;;  %v1000_v5 = vpop.f32.mrb[2].mxu0  ;;  %v897_v31 = vmax.f32 %v885_v25, 0.0  ;;  %v888_v32 = vadd.f32 %v1004_v30, %v972_v15  ;;  %v879_v35 = vpop.f32.mrb[3].mxu1 }
 0x1c6   : > { %v893_v6 = vmax.f32 %v869_v24, 0.0  ;;  %v872_v17 = vadd.f32 %v1000_v5, %v972_v15  ;;  %v863_v18 = vpop.f32.mrb[3].mxu0  ;;  %v895_v37 = vmax.f32 %v877_v29, 0.0  ;;  %v880_v38 = vadd.f32 %v972_v15, %v879_v35 }
 0x1c7   : > { %v891_v36 = vmax.f32 %v861_v28, 0.0  ;;  %v864_v33 = vadd.f32 %v972_v15, %v863_v18  ;;  %906 = vst.msk [vmem:[%s170_s14 + $0x30] sm:$0xff] %vm899_vm1, %v897_v31  ;;  %v898_v39 = vmax.f32 %v888_v32, 0.0 }
 0x1c8   : > { %902 = vst.msk [vmem:[%s170_s14 + $0x10] sm:$0xff] %vm899_vm1, %v893_v6  ;;  %v894_v34 = vmax.f32 %v872_v17, 0.0  ;;  %904 = vst.msk [vmem:[%s170_s14 + $0x20] sm:$0xff] %vm899_vm1, %v895_v37  ;;  %v896_v41 = vmax.f32 %v880_v38, 0.0 }
 0x1c9   : > { %900 = vst.msk [vmem:[%s170_s14] sm:$0xff] %vm899_vm1, %v891_v36  ;;  %v892_v40 = vmax.f32 %v864_v33, 0.0  ;;  %907 = vst.msk [vmem:[%s170_s14 + $0x38] sm:$0xff] %vm899_vm1, %v898_v39 }
 0x1ca   : > { %903 = vst.msk [vmem:[%s170_s14 + $0x18] sm:$0xff] %vm899_vm1, %v894_v34  ;;  %905 = vst.msk [vmem:[%s170_s14 + $0x28] sm:$0xff] %vm899_vm1, %v896_v41 }
 0x1cb   : > { %901 = vst.msk [vmem:[%s170_s14 + $0x8] sm:$0xff] %vm899_vm1, %v892_v40 }
 0x1cc PF: > { %s13_s12 = sadd.s32 1, %s1279_s12  }
 0x1cd   : > { %p10_p4 = scmp.ge.s32.totalorder %s13_s12, 4  }
 0x1cf   :  { %12 = sbr.rel (!%p10_p4) target bundleno = 1 (0x1), region = 64 }

// kernel: conv_encoder_forward.7
= control target key start
LH: loop header
LB: loop body
LE: loop exit
PB: predicated region body
PF: predicated region fallthrough
CT: control target
= control target key end

     0   :  { %v218_v1 = vmov 0.0   ;;  %vm219_vm0 = vmmov 0   ;;  %s283_s0 = inlined_call_operand.vmem [shape: f32[2,128], index: 0, kind: input, shape index: {}]   ;;  %s284_s1 = inlined_call_operand.vmem [shape: bf16[128,16], index: 1, kind: input, shape index: {}]   ;;  %s285_s2 = inlined_call_operand.vmem [shape: f32[1,16], index: 2, kind: input, shape index: {}]   ;;  %s286_s3 = inlined_call_operand.hbm [shape: f32[2,16], index: 3, kind: output, shape index: {}]  }
   0x1   :  { %v186_v0 = vld [vmem:[%s284_s1] sm:$0xff]   ;;  %163 = vmatprep.subr.bf16.mxu0 %v218_v1  ;;  %v187_v2 = vld [vmem:[%s284_s1 + $0x8] sm:$0xff]   ;;  %179 = vmatprep.mubr.msk.bf16.mxu0 %vm219_vm0, %v218_v1  ;;  %v188_v3 = vld [vmem:[%s284_s1 + $0x10] sm:$0xff]  }
   0x2   :  { %164 = vmatpush3.bf16.msra.mxu0 %v186_v0 }
   0x3   :  { %165 = vmatprep.subr.bf16.mxu0 %v218_v1 }
   0x6   :  { %166 = vmatpush3.bf16.msra.mxu0 %v187_v2 }
   0x7   :  { %167 = vmatprep.subr.bf16.mxu0 %v218_v1 }
   0x8   :  { %8 = vsyncpa [#allocation3], 0  ;;  %v189_v4 = vld [vmem:[%s284_s1 + $0x18] sm:$0xff]   ;;  %v190_v5 = vld [vmem:[%s284_s1 + $0x20] sm:$0xff]   ;;  %s220_s5 = smov [#allocation2]   ;;  %vm129_vm1 = vcmask 123904  }
   0x9   :  { %v191_v6 = vld [vmem:[%s284_s1 + $0x28] sm:$0xff]   ;;  %v192_v7 = vld [vmem:[%s284_s1 + $0x30] sm:$0xff]   ;;  %v193_v8 = vld [vmem:[%s284_s1 + $0x38] sm:$0xff]   ;;  %s137_s6 = sshll.u32 %s220_s5, 4  ;;  %s138_s6 = int_to_ptr.vmem [resolvable:$true] %s137_s6 }
   0xa   :  { %168 = vmatpush3.bf16.msra.mxu0 %v188_v3  ;;  %v16_v9 = vld [vmem:[%s283_s0] sm:$0x3]  ;;  %s194_s1 = scalar_lea.vmem %s138_s6, 32  ;;  %p199_p1 = scmp.lt.s32.totalorder %s138_s6, %s138_s6 }
   0xb   :  { %169 = vmatprep.subr.bf16.mxu0 %v218_v1  ;;  %v17_v10 = vpack.c.bf16 %v16_v9, %v16_v9  ;;  %v145_v11 = vld [vmem:[%s285_s2] ss:$0 sm:$0xff]  ;;  %p195_p0 = scmp.ne.s32.totalorder %s138_s6, %s194_s1  ;;  %p200_p2 = scmp.lt.s32.totalorder %s194_s1, %s194_s1 }
   0xd   :  { %p201_p3 = por %p200_p2, %p199_p1 }
   0xe   :  { %170 = vmatpush3.bf16.msra.mxu0 %v189_v4 }
   0xf   :  { %171 = vmatprep.subr.bf16.mxu0 %v218_v1  ;;  %p202_p4 = pnand %p201_p3, %p195_p0 }
  0x12   :  { %172 = vmatpush3.bf16.msra.mxu0 %v190_v5 }
  0x13   :  { %173 = vmatprep.subr.bf16.mxu0 %v218_v1 }
  0x16   :  { %174 = vmatpush3.bf16.msra.mxu0 %v191_v6 }
  0x17   :  { %175 = vmatprep.subr.bf16.mxu0 %v218_v1 }
  0x1a   :  { %176 = vmatpush3.bf16.msra.mxu0 %v192_v7 }
  0x1b   :  { %177 = vmatprep.subr.bf16.mxu0 %v218_v1 }
  0x1e   :  { %178 = vmatpush3.bf16.msra.mxu0 %v193_v8 }
  0x21   :  { %180 = vmatmul.mubr.bf16.vlgmr.msra.gmra.mrb[0].mxu0 %v17_v10 }
  0xf4   :  { %v123_v12 = vpop.f32.mrb[0].mxu0 }
  0xf5   :  { %v124_v13 = vadd.f32 %v145_v11, %v123_v12  ;;  %v181_v14 = vpop.f32.mrb[1].mxu0 }
  0xf6   :  { %v126_v15 = vpop.f32.mrb[2].mxu0 }
  0xf7   :  { %v182_v16 = vpop.f32.mrb[3].mxu0  ;;  %130 = vst.msk [vmem:[#allocation2] sm:$0x3] %vm129_vm1, %v124_v13 }
  0xf8   :  { %205 = shalt.err (!%p202_p4)
}
  0xf9   :  { %s206_s2 = scalar_lea.hbm %s286_s3, 32 }
  0xfa   :  { %p207_p5 = scmp.ne.s32.totalorder %s286_s3, %s206_s2  ;;  %p210_p6 = scmp.lt.u32.totalorder %s206_s2, %s286_s3 }
  0xfc   :  { %p212_p7 = pnand %p210_p6, %p207_p5 }
  0xfe   :  { %215 = shalt.err (!%p212_p7)
}
  0xff   :  { %140 = dma.vmem_to_hbm [thread:$0]  %s138_s6, 32, %s286_s3, [#allocation3]  }
 0x100   :  { %216 = dma.done.wait [#allocation3], 32  }
 0x101   :  { %217 = vsyncadd [#allocation3], 4294967264 }
 0x102   :  { %144 = vsyncpa [#allocation3], 1 }

// kernel: conv_encoder_forward.6
= control target key start
LH: loop header
LB: loop body
LE: loop exit
PB: predicated region body
PF: predicated region fallthrough
CT: control target
= control target key end

     0   :  { %s721_s12 = smov 0   ;;  %s828_s0 = inlined_call_operand.vmem [shape: f32[2,2,2,64], index: 0, kind: input, shape index: {}]   ;;  %s829_s1 = inlined_call_operand.vmem [shape: bf16[256,32], index: 1, kind: input, shape index: {}]   ;;  %s830_s2 = inlined_call_operand.vmem [shape: f32[1,32], index: 2, kind: input, shape index: {}]   ;;  %s831_s3 = inlined_call_operand.vmem [shape: f32[2,2,2,32], index: 3, kind: output, shape index: {}]  }
   0x1 LB: > { %s605_s13 = sadd.s32 4294967295, %s693_s12   ;;  %p609_p0 = scmp.ge.s32.totalorder %s693_s12, 1  ;;  %s693_s12 = sphi %s721_s12, %s13_s12  }
   0x2   : > { %p137_p1 = scmp.lt.s32.totalorder %s693_s12, 3 }
   0x4   : > { %p138_p2 = pnand %p609_p0, %p137_p1 }
   0x5   : > { %vm172_vm0 = vcmask (!%p138_p2), 519168   ;;  %v695_v0 = vmov (!%p138_p2), 0.0   ;;  %p161_p3 = scmp.lt.s32.totalorder (!%p138_p2), %s605_s13, 1  ;;  %vm180_vm1 = vcmask (!%p138_p2), 517120   ;;  %s696_s18 = smov (!%p138_p2), 112   ;;  %v671_v11 = vld [vmem:[%s829_s1 + $0x40] sm:$0xff] (!%p138_p2)   ;;  %v335_v57 = vlaneseq (!%p138_p2) }
   0x6   : > { %141 = sbr.rel (%p138_p2) target bundleno = 419 (0x1a3), region = 32  ;;  %173 = vst.msk [vmem:[#allocation2] sm:$0xf] (!%p138_p2), %vm172_vm0, %v695_v0  ;;  %174 = vst.msk [vmem:[#allocation2 + $0x4] sm:$0xf] (!%p138_p2), %vm172_vm0, %v695_v0  ;;  %s697_s19 = smov (!%p138_p2), 80   ;;  %635 = vmatprep.subr.bf16.mxu0 (!%p138_p2), %v671_v11 }
   0x7   : > { %175 = vst.msk [vmem:[#allocation2 + $0x8] sm:$0xf] (!%p138_p2), %vm172_vm0, %v695_v0  ;;  %176 = vst.msk [vmem:[#allocation2 + $0xc] sm:$0xf] (!%p138_p2), %vm172_vm0, %v695_v0  ;;  %v672_v12 = vld [vmem:[%s829_s1] sm:$0xff] (!%p138_p2)   ;;  %v673_v15 = vld [vmem:[%s829_s1 + $0x48] sm:$0xff] (!%p138_p2)  }
   0x8   : > { %636 = vmatpush3.bf16.msra.mxu0 (!%p138_p2), %v672_v12  ;;  %v674_v16 = vld [vmem:[%s829_s1 + $0x8] sm:$0xff] (!%p138_p2)   ;;  %s698_s28 = smov (!%p138_p2), 16   ;;  %v675_v19 = vld [vmem:[%s829_s1 + $0x50] sm:$0xff] (!%p138_p2)   ;;  %v677_v21 = vld [vmem:[%s829_s1 + $0x58] sm:$0xff] (!%p138_p2)   ;;  %s699_s8 = smov (!%p138_p2), 48   ;;  %vm292_vm2 = vcmask (!%p138_p2), 130048  }
   0x9   : > { %637 = vmatprep.subr.bf16.mxu0 (!%p138_p2), %v673_v15  ;;  %v676_v20 = vld [vmem:[%s829_s1 + $0x10] sm:$0xff] (!%p138_p2)   ;;  %v678_v22 = vld [vmem:[%s829_s1 + $0x18] sm:$0xff] (!%p138_p2)   ;;  %v679_v25 = vld [vmem:[%s829_s1 + $0x60] sm:$0xff] (!%p138_p2)   ;;  %v700_v55 = vmov (!%p138_p2), 1983009808   ;;  %vm295_vm3 = vcmask (!%p138_p2), 261120  }
   0xa   : > { %v680_v26 = vld [vmem:[%s829_s1 + $0x20] sm:$0xff] (!%p138_p2)   ;;  %v681_v27 = vld [vmem:[%s829_s1 + $0x68] sm:$0xff] (!%p138_p2)   ;;  %v683_v31 = vld [vmem:[%s829_s1 + $0x70] sm:$0xff] (!%p138_p2)   ;;  %v333_v56 = vunpack.c.l.s4 (!%p138_p2), %v700_v55  ;;  %vm298_vm4 = vcmask (!%p138_p2), 392192   ;;  %vm301_vm5 = vcmask (!%p138_p2), 523264   ;;  %vm304_vm6 = vcmask (!%p138_p2), 654336  }
   0xb   : > { %v682_v28 = vld [vmem:[%s829_s1 + $0x28] sm:$0xff] (!%p138_p2)   ;;  %v684_v32 = vld [vmem:[%s829_s1 + $0x30] sm:$0xff] (!%p138_p2)   ;;  %v685_v33 = vld [vmem:[%s829_s1 + $0x78] sm:$0xff] (!%p138_p2)   ;;  %vm307_vm7 = vcmask (!%p138_p2), 785408   ;;  %vm310_vm8 = vcmask (!%p138_p2), 916480   ;;  %vm547_vm9 = vcmask (!%p138_p2), 254976  }
   0xc   : > { %638 = vmatpush3.bf16.msra.mxu0 (!%p138_p2), %v674_v16  ;;  %v686_v34 = vld [vmem:[%s829_s1 + $0x38] sm:$0xff] (!%p138_p2)   ;;  %v334_v0 = vunpack.c.0.s8 (!%p138_p2), %v333_v56 }
   0xd   : > { %s833_s13 = smov (!%p161_p3, %s605_s13), 1  ;;  %v185_v3 = vld [vmem:[#allocation2 + $0x1] sm:$0x3]  ;;  %639 = vmatprep.subr.bf16.mxu0 %v675_v19 }
   0xe   : > { %s633_s14 = sshll.u32 %s833_s13, 2  ;;  %v183_v4 = vld [vmem:[#allocation2] sm:$0x3]  ;;  %212 = vrot.lane.b32.xlu1 %v185_v3, %s696_s18  ;;  %v187_v14 = vld [vmem:[#allocation2 + $0x2] sm:$0x3] }
   0xf   : > { %s165_s17 = scalar_lea.vmem %s828_s0, %s633_s14  ;;  %204 = vrot.lane.b32.xlu0 %v183_v4, %s697_s19  ;;  %v197_v23 = vld [vmem:[#allocation2 + $0xc] sm:$0x3]  ;;  %v201_v35 = vld [vmem:[#allocation2 + $0xe] sm:$0x3]  ;;  %s170_s7 = scalar_lea.vmem %s831_s3, %s633_s14 }
  0x10   : > { %v177_v1 = vld [vmem:[%s165_s17] sm:$0x3]  ;;  %v178_v2 = vld [vmem:[%s165_s17 + $0x2] sm:$0x3]  ;;  %640 = vmatpush3.bf16.msra.mxu0 %v676_v20  ;;  %v199_v29 = vld [vmem:[#allocation2 + $0xd] sm:$0x3] }
  0x11   : > { %181 = vst.msk [vmem:[#allocation2 + $0x5] sm:$0x3] %vm180_vm1, %v177_v1  ;;  %182 = vst.msk [vmem:[#allocation2 + $0x9] sm:$0x3] %vm180_vm1, %v178_v2  ;;  %641 = vmatprep.subr.bf16.mxu0 %v677_v21  ;;  %v336_v1 = vshrl.u32 %v335_v57, 7 }
  0x13   : > { %v337_v20 = vsub.s32 %v334_v0, %v336_v1 }
  0x14   : > { %642 = vmatpush3.bf16.msra.mxu0 %v678_v22 }
  0x15   : > { %643 = vmatprep.subr.bf16.mxu0 %v679_v25 }
  0x18   : > { %v186_v5 = vld [vmem:[#allocation2 + $0x5] sm:$0x3]  ;;  %v190_v7 = vld [vmem:[#allocation2 + $0x8] sm:$0x3]  ;;  %v194_v17 = vld [vmem:[#allocation2 + $0xa] sm:$0x3]  ;;  %644 = vmatpush3.bf16.msra.mxu0 %v680_v26 }
  0x19   : > { %v184_v6 = vld [vmem:[#allocation2 + $0x4] sm:$0x3]  ;;  %214 = vrot.lane.b32.xlu1 %v186_v5, %s696_s18  ;;  %v192_v9 = vld [vmem:[#allocation2 + $0x9] sm:$0x3]  ;;  %v188_v13 = vld [vmem:[#allocation2 + $0x6] sm:$0x3]  ;;  %645 = vmatprep.subr.bf16.mxu0 %v681_v27 }
  0x1a   : > { %206 = vrot.lane.b32.xlu0 %v184_v6, %s697_s19  ;;  %v189_v8 = vld [vmem:[#allocation2 + $0x4] sm:$0x3]  ;;  %v193_v18 = vld [vmem:[#allocation2 + $0x6] sm:$0x3]  ;;  %v196_v24 = vld [vmem:[#allocation2 + $0x8] sm:$0x3] }
  0x1b   : > { %v191_v10 = vld [vmem:[#allocation2 + $0x5] sm:$0x3]  ;;  %v198_v30 = vld [vmem:[#allocation2 + $0x9] sm:$0x3] }
  0x1c   : > { %646 = vmatpush3.bf16.msra.mxu0 %v682_v28  ;;  %v200_v36 = vld [vmem:[#allocation2 + $0xa] sm:$0x3] }
  0x1d   : > { %252 = vrot.lane.b32.xlu1 %v190_v7, %s697_s19  ;;  %647 = vmatprep.subr.bf16.mxu0 %v683_v31 }
  0x1e   : > { %250 = vrot.lane.b32.xlu0 %v189_v8, %s697_s19 }
  0x20   : > { %648 = vmatpush3.bf16.msra.mxu0 %v684_v32 }
  0x21   : > { %258 = vrot.lane.b32.xlu1 %v192_v9, %s696_s18  ;;  %649 = vmatprep.subr.bf16.mxu0 %v685_v33 }
  0x22   : > { %256 = vrot.lane.b32.xlu0 %v191_v10, %s696_s18 }
  0x24   : > { %650 = vmatpush3.bf16.msra.mxu0 %v686_v34 }
  0x25   : > { %222 = vrot.lane.b32.xlu1 %v188_v13, %s698_s28 }
  0x26   : > { %220 = vrot.lane.b32.xlu0 %v187_v14, %s698_s28 }
  0x29   : > { %264 = vrot.lane.b32.xlu1 %v194_v17, %s698_s28 }
  0x2a   : > { %262 = vrot.lane.b32.xlu0 %v193_v18, %s698_s28 }
  0x2d   : > { %230 = vrot.lane.b32.xlu1 %v190_v7, %s699_s8 }
  0x2e   : > { %228 = vrot.lane.b32.xlu0 %v189_v8, %s699_s8 }
  0x31   : > { %272 = vrot.lane.b32.xlu1 %v197_v23, %s699_s8 }
  0x32   : > { %270 = vrot.lane.b32.xlu0 %v196_v24, %s699_s8 }
  0x35   : > { %238 = vrot.lane.b32.xlu1 %v192_v9, %s697_s19 }
  0x36   : > { %236 = vrot.lane.b32.xlu0 %v191_v10, %s697_s19 }
  0x39   : > { %280 = vrot.lane.b32.xlu1 %v199_v29, %s697_s19 }
  0x3a   : > { %278 = vrot.lane.b32.xlu0 %v198_v30, %s697_s19 }
  0x3d   : > { %246 = vrot.lane.b32.xlu1 %v194_v17, %s696_s18 }
  0x3e   : > { %244 = vrot.lane.b32.xlu0 %v193_v18, %s696_s18 }
  0x41   : > { %288 = vrot.lane.b32.xlu1 %v201_v35, %s696_s18 }
  0x42   : > { %286 = vrot.lane.b32.xlu0 %v200_v36, %s696_s18 }
  0x80   : > { %v213_v37 = vpop.permute.xlu1 %212 }
  0x81   : > { %v205_v38 = vpop.permute.xlu0 %204 }
  0x82   : > { %v293_v58 = vsel %vm292_vm2, %v205_v38, %v213_v37 }
  0x83   : > { %v296_v5 = vsel %vm295_vm3, %v293_v58, %v213_v37 }
  0x8b   : > { %v215_v39 = vpop.permute.xlu1 %214 }
  0x8c   : > { %v207_v40 = vpop.permute.xlu0 %206 }
  0x8d   : > { %v294_v59 = vsel %vm292_vm2, %v207_v40, %v215_v39 }
  0x8e   : > { %v297_v4 = vsel %vm295_vm3, %v294_v59, %v215_v39 }
  0x8f   : > { %v253_v41 = vpop.permute.xlu1 %252 }
  0x90   : > { %v251_v42 = vpop.permute.xlu0 %250 }
  0x93   : > { %v259_v43 = vpop.permute.xlu1 %258 }
  0x94   : > { %v257_v44 = vpop.permute.xlu0 %256  ;;  %v314_v60 = vsel %vm292_vm2, %v253_v41, %v259_v43  ;;  %v614_v41 = vld [vmem:[%s830_s2] ss:$0 sm:$0xff] }
  0x95   : > { %v313_v61 = vsel %vm292_vm2, %v251_v42, %v257_v44  ;;  %v316_v2 = vsel %vm295_vm3, %v314_v60, %v259_v43 }
  0x96   : > { %v315_v3 = vsel %vm295_vm3, %v313_v61, %v257_v44 }
  0x97   : > { %v223_v45 = vpop.permute.xlu1 %222 }
  0x98   : > { %v221_v46 = vpop.permute.xlu0 %220  ;;  %v300_v6 = vsel %vm298_vm4, %v297_v4, %v223_v45 }
  0x99   : > { %v299_v7 = vsel %vm298_vm4, %v296_v5, %v221_v46 }
  0x9b   : > { %v265_v47 = vpop.permute.xlu1 %264 }
  0x9c   : > { %v263_v48 = vpop.permute.xlu0 %262  ;;  %v318_v8 = vsel %vm298_vm4, %v316_v2, %v265_v47 }
  0x9d   : > { %v317_v9 = vsel %vm298_vm4, %v315_v3, %v263_v48 }
  0x9f   : > { %v231_v49 = vpop.permute.xlu1 %230 }
  0xa0   : > { %v229_v50 = vpop.permute.xlu0 %228  ;;  %v303_v10 = vsel %vm301_vm5, %v300_v6, %v231_v49 }
  0xa1   : > { %v302_v11 = vsel %vm301_vm5, %v299_v7, %v229_v50 }
  0xa3   : > { %v273_v51 = vpop.permute.xlu1 %272 }
  0xa4   : > { %v271_v52 = vpop.permute.xlu0 %270  ;;  %v320_v12 = vsel %vm301_vm5, %v318_v8, %v273_v51 }
  0xa5   : > { %v319_v13 = vsel %vm301_vm5, %v317_v9, %v271_v52 }
  0xa7   : > { %v239_v53 = vpop.permute.xlu1 %238 }
  0xa8   : > { %v237_v54 = vpop.permute.xlu0 %236  ;;  %v306_v16 = vsel %vm304_vm6, %v303_v10, %v239_v53 }
  0xa9   : > { %v305_v17 = vsel %vm304_vm6, %v302_v11, %v237_v54  ;;  %v309_v21 = vsel %vm307_vm7, %v306_v16, %v239_v53 }
  0xaa   : > { %v308_v22 = vsel %vm307_vm7, %v305_v17, %v237_v54 }
  0xab   : > { %v281_v62 = vpop.permute.xlu1 %280 }
  0xac   : > { %v279_v63 = vpop.permute.xlu0 %278  ;;  %v322_v18 = vsel %vm304_vm6, %v320_v12, %v281_v62 }
  0xad   : > { %v321_v19 = vsel %vm304_vm6, %v319_v13, %v279_v63  ;;  %v324_v23 = vsel %vm307_vm7, %v322_v18, %v281_v62 }
  0xae   : > { %v323_v24 = vsel %vm307_vm7, %v321_v19, %v279_v63 }
  0xaf   : > { %v247_v14 = vpop.permute.xlu1 %246 }
  0xb0   : > { %v245_v15 = vpop.permute.xlu0 %244  ;;  %v312_v27 = vsel %vm310_vm8, %v309_v21, %v247_v14 }
  0xb1   : > { %v311_v28 = vsel %vm310_vm8, %v308_v22, %v245_v15 }
  0xb3   : > { %v289_v25 = vpop.permute.xlu1 %288 }
  0xb4   : > { %v287_v26 = vpop.permute.xlu0 %286  ;;  %v326_v29 = vsel %vm310_vm8, %v324_v23, %v289_v25 }
  0xb5   : > { %v325_v30 = vsel %vm310_vm8, %v323_v24, %v287_v26  ;;  %v339_v31 = vcombine.low %v312_v27, %v326_v29 }
  0xb6   : > { %v331_v32 = vcombine.low %v311_v28, %v325_v30 }
  0xb7   : > { %v346_v33 = vrot.slane %v339_v31, %v337_v20 }
  0xb8   : > { %v338_v34 = vrot.slane %v331_v32, %v337_v20 }
  0xba   : > { %v347_v35 = vcombine.low %v338_v34, %v346_v33 }
  0xbc   : > { %v354_v36 = vrot.slane %v347_v35, %v337_v20 }
  0xbe   : > { %v355_v37 = vcombine.high %v354_v36, %v354_v36  ;;  %v358_v39 = vpack.c.bf16 %v354_v36, %v354_v36 }
  0xc0   : > { %v359_v38 = vpack.c.bf16 %v355_v37, %v355_v37 }
  0xc2   : > { %527 = vmatprep.mubr.bf16.mxu0 %v359_v38 }
  0xc3   : > { %528 = vmatmul.mubr.bf16.vlgmr.msra.gmra.mrb[0].mxu0 %v358_v39 }
 0x196   : > { %v651_v40 = vpop.f32.mrb[0].mxu0 }
 0x197   : > { %v652_v42 = vpop.f32.mrb[1].mxu0 }
 0x198   : > { %v653_v43 = vadd.f32 %v652_v42, %v651_v40  ;;  %v654_v44 = vpop.f32.mrb[2].mxu0 }
 0x199   : > { %v655_v45 = vpop.f32.mrb[3].mxu0 }
 0x19a   : > { %v530_v46 = vadd.f32 %v653_v43, %v614_v41 }
 0x19c   : > { %v535_v47 = vmax.f32 %v530_v46, 0.0 }
 0x19e   : > { %v543_v48 = vrot.slane %v535_v47, %v337_v20 }
 0x1a0   : > { %v544_v49 = vcombine.high %v543_v48, %v543_v48  ;;  %548 = vst.msk [vmem:[%s170_s7] sm:$0x3] %vm547_vm9, %v543_v48 }
 0x1a2   : > { %549 = vst.msk [vmem:[%s170_s7 + $0x2] sm:$0x3] %vm547_vm9, %v544_v49 }
 0x1a3 PF: > { %s13_s12 = sadd.s32 1, %s693_s12  }
 0x1a4   : > { %p10_p4 = scmp.ge.s32.totalorder %s13_s12, 4  }
 0x1a6   :  { %12 = sbr.rel (!%p10_p4) target bundleno = 1 (0x1), region = 64 }

</bundles_post_ra>
